<compile_context>
chip_gen: v6e
topology: v6e:2x2x1
jax: 0.10.0
libtpu: 0.0.40
codegen_flags: <defaults>
</compile_context>

<pallas_src>
import jax
import jax.numpy as jnp
import numpy as np
from jax.experimental import pallas as pl
from jax.experimental.pallas import tpu as pltpu

EPS = 1e-5


def _round_up(x, m):
    return ((x + m - 1) // m) * m


def _budgets():
    """(vmem_limit_bytes, max_row_tile): conservative unless a 128 MiB part is found."""
    vmem_limit, max_rows = 48 * 1024 * 1024, 1024          # safe on v5e/v6e/v7x
    try:
        info = pltpu.get_tpu_info()
        cap = None
        for name in ("vmem_capacity_bytes", "vmem_bytes", "vmem_size_bytes"):
            cap = getattr(info, name, None)
            if cap:
                break
        if cap is not None and int(cap) > 64 * 1024 * 1024:  # v5e / v6e: 128 MiB VMEM
            vmem_limit, max_rows = 96 * 1024 * 1024, 2048
    except Exception:
        pass
    return vmem_limit, max_rows


VMEM_LIMIT_BYTES, MAX_ROW_TILE = _budgets()


def _pick_row_tile(m, max_rows=MAX_ROW_TILE):
    """Largest multiple-of-8 divisor of m that is <= max_rows (m itself if small)."""
    if m <= max_rows:
        return m
    for t in range(max_rows - max_rows % 8, 7, -8):
        if m % t == 0:
            return t
    return 8   # callers guarantee m % 8 == 0


def _stats_rows(y, cp):
    """Per-tile column sum / sum-of-squares packed into row 0 of an (8, cp) block
    (rows 1..7 zero) so partial-stat outputs stay (8, 128)-tile friendly and can
    simply be jnp.sum'ed over axis 0 in JAX."""
    rows = jax.lax.broadcasted_iota(jnp.int32, (8, cp), 0)
    s = jnp.where(rows == 0,
                  jnp.broadcast_to(jnp.sum(y, axis=0, keepdims=True), (8, cp)), 0.0)
    q = jnp.where(rows == 0,
                  jnp.broadcast_to(jnp.sum(y * y, axis=0, keepdims=True), (8, cp)), 0.0)
    return s, q


# ---------------------------------------------------------------------------
# Kernel 1: stage-A matmul (fused conv_1 + conv_3 on the shared im2col patch
# matrix) + per-tile partial BN statistics.  Grid axis is fully parallel.
# ---------------------------------------------------------------------------
def _mm_stats_kernel(p_ref, w_ref, y_ref, s_ref, q_ref):
    y = jnp.dot(p_ref[...], w_ref[...], preferred_element_type=jnp.float32)
    y_ref[...] = y
    s, q = _stats_rows(y, y.shape[1])
    s_ref[...] = s
    q_ref[...] = q


def matmul_with_stats(patches, w_mat, tm):
    m, kk = patches.shape                      # m is a multiple of tm (pre-padded)
    cp = w_mat.shape[1]
    nt = m // tm
    return pl.pallas_call(
        _mm_stats_kernel,
        out_shape=(
            jax.ShapeDtypeStruct((m, cp), jnp.float32),
            jax.ShapeDtypeStruct((8 * nt, cp), jnp.float32),
            jax.ShapeDtypeStruct((8 * nt, cp), jnp.float32),
        ),
        grid=(nt,),
        in_specs=[
            pl.BlockSpec((tm, kk), lambda i: (i, 0)),
            pl.BlockSpec((kk, cp), lambda i: (0, 0)),    # weights resident
        ],
        out_specs=(
            pl.BlockSpec((tm, cp), lambda i: (i, 0)),
            pl.BlockSpec((8, cp), lambda i: (i, 0)),
            pl.BlockSpec((8, cp), lambda i: (i, 0)),
        ),
        compiler_params=pltpu.CompilerParams(
            dimension_semantics=("parallel",),
            vmem_limit_bytes=VMEM_LIMIT_BYTES,
        ),
    )(patches, w_mat)


# ---------------------------------------------------------------------------
# Kernel 2: stage-A BN apply.  Splits the fused slab into
#   h1       = relu(bn1(conv1))  (bf16, lanes [0:cout] of a cp1-wide slab)
#   shortcut = bn3(conv3)        (f32,  realigned to lanes [0:cout])
# ---------------------------------------------------------------------------
def _make_stagea_apply_kernel(cout, cp1, cp2):
    def kernel(y_ref, sc_ref, sh_ref, h1_ref, res_ref):
        z = y_ref[...] * sc_ref[...] + sh_ref[...]              # (tm, cp2) f32
        # conv1 lives in lanes [0:cout]; junk beyond cout is harmless because
        # conv_2's weight rows there are zero.
        h1_ref[...] = jnp.maximum(z[:, :cp1], 0.0).astype(jnp.bfloat16)
        # conv3 lives in lanes [cout:2*cout]; realign it to lanes [0:cout].
        if cout % 128 == 0:
            res_ref[...] = z[:, cout:cout + cp1]                # lane-aligned slice
        else:
            rot = jnp.concatenate([z[:, cout:], z[:, :cout]], axis=1)
            res_ref[...] = rot[:, :cp1]
    return kernel


def stagea_apply(y13, scale, shift, cout, cp1, tm):
    m, cp2 = y13.shape
    return pl.pallas_call(
        _make_stagea_apply_kernel(cout, cp1, cp2),
        out_shape=(
            jax.ShapeDtypeStruct((m, cp1), jnp.bfloat16),       # h1 (conv_2 operand)
            jax.ShapeDtypeStruct((m, cp1), jnp.float32),        # shortcut (residual)
        ),
        grid=(m // tm,),
        in_specs=[
            pl.BlockSpec((tm, cp2), lambda i: (i, 0)),
            pl.BlockSpec((1, cp2), lambda i: (0, 0)),
            pl.BlockSpec((1, cp2), lambda i: (0, 0)),
        ],
        out_specs=(
            pl.BlockSpec((tm, cp1), lambda i: (i, 0)),
            pl.BlockSpec((tm, cp1), lambda i: (i, 0)),
        ),
        compiler_params=pltpu.CompilerParams(
            dimension_semantics=("parallel",),
            vmem_limit_bytes=VMEM_LIMIT_BYTES,
        ),
    )(y13, scale, shift)


# ---------------------------------------------------------------------------
# Kernel 3: conv_2 without any im2col / padded-image materialization.
# Per batch: copy the flat (Ho*Wo, cp1) h1 block into the middle of a VMEM
# scratch with zeroed halo rows; the 3x3 conv is 9 accumulating bf16 matmuls
# over shifted row windows of the scratch (column wrap masked by iota masks).
# ---------------------------------------------------------------------------
def _make_conv2_kernel(k, ho, wo, cp1, pad_top, rows_scr):
    howo = ho * wo
    pad = k // 2

    def kernel(h_ref, w_ref, y_ref, s_ref, q_ref, scr_ref):
        # Zero halo rows every grid step (megacore-safe), place this image.
        scr_ref[0:pad_top, :] = jnp.zeros((pad_top, cp1), jnp.float32)
        scr_ref[pad_top + howo:rows_scr, :] = jnp.zeros(
            (rows_scr - pad_top - howo, cp1), jnp.float32)
        scr_ref[pad_top:pad_top + howo, :] = h_ref[...].astype(jnp.float32)

        col = jax.lax.broadcasted_iota(jnp.int32, (howo, 1), 0) % wo

        first = True
        for kh in range(k):
            di = kh - pad
            for kw in range(k):
                dj = kw - pad
                start = pad_top + di * wo + dj
                patch = scr_ref[start:start + howo, :]
                if dj != 0:
                    ok = jnp.logical_and(col + dj >= 0, col + dj < wo)
                    patch = jnp.where(ok, patch, 0.0)
                contrib = jnp.dot(patch.astype(jnp.bfloat16), w_ref[kh * k + kw],
                                  preferred_element_type=jnp.float32)
                if first:
                    y_ref[...] = contrib
                    first = False
                else:
                    y_ref[...] += contrib

        y = y_ref[...]
        s, q = _stats_rows(y, cp1)
        s_ref[...] = s
        q_ref[...] = q

    return kernel


def conv2_with_stats(h1_flat, w2_taps, n, ho, wo, k):
    cp1 = w2_taps.shape[-1]
    howo = ho * wo
    pad = k // 2
    halo = pad * wo + pad
    pad_top = _round_up(halo, 8)
    rows_scr = _round_up(pad_top + howo + halo, 8)
    # TODO(synk): for very large Ho*Wo, stripe rows of the image (with a halo)
    #             instead of one whole-image block per grid step (v7x VMEM).
    return pl.pallas_call(
        _make_conv2_kernel(k, ho, wo, cp1, pad_top, rows_scr),
        out_shape=(
            jax.ShapeDtypeStruct((n * howo, cp1), jnp.float32),
            jax.ShapeDtypeStruct((8 * n, cp1), jnp.float32),
            jax.ShapeDtypeStruct((8 * n, cp1), jnp.float32),
        ),
        grid=(n,),
        in_specs=[
            pl.BlockSpec((howo, cp1), lambda i: (i, 0)),
            pl.BlockSpec((k * k, cp1, cp1), lambda i: (0, 0, 0)),
        ],
        out_specs=(
            pl.BlockSpec((howo, cp1), lambda i: (i, 0)),
            pl.BlockSpec((8, cp1), lambda i: (i, 0)),
            pl.BlockSpec((8, cp1), lambda i: (i, 0)),
        ),
        scratch_shapes=[pltpu.VMEM((rows_scr, cp1), jnp.float32)],
        compiler_params=pltpu.CompilerParams(
            dimension_semantics=("parallel",),
            vmem_limit_bytes=VMEM_LIMIT_BYTES,
        ),
    )(h1_flat, w2_taps)


# ---------------------------------------------------------------------------
# Kernel 4: final BN apply + residual add + ReLU.
# ---------------------------------------------------------------------------
def _final_apply_kernel(y_ref, sc_ref, sh_ref, r_ref, o_ref):
    o_ref[...] = jnp.maximum(y_ref[...] * sc_ref[...] + sh_ref[...] + r_ref[...], 0.0)


def final_apply(y2, scale, shift, residual, sub):
    m, cp1 = y2.shape
    return pl.pallas_call(
        _final_apply_kernel,
        out_shape=jax.ShapeDtypeStruct((m, cp1), jnp.float32),
        grid=(m // sub,),
        in_specs=[
            pl.BlockSpec((sub, cp1), lambda i: (i, 0)),
            pl.BlockSpec((1, cp1), lambda i: (0, 0)),
            pl.BlockSpec((1, cp1), lambda i: (0, 0)),
            pl.BlockSpec((sub, cp1), lambda i: (i, 0)),
        ],
        out_specs=pl.BlockSpec((sub, cp1), lambda i: (i, 0)),
        compiler_params=pltpu.CompilerParams(
            dimension_semantics=("parallel",),
            vmem_limit_bytes=VMEM_LIMIT_BYTES,
        ),
    )(y2, scale, shift, residual)


# ---------------------------------------------------------------------------
# Plain-JAX glue: im2col for the strided convs, weight packing, BN folding.
# ---------------------------------------------------------------------------
def _im2col_nhwc(x_nhwc, k, stride, pad, ho, wo, kkp, m1p):
    n = x_nhwc.shape[0]
    c = x_nhwc.shape[-1]
    xp = jnp.pad(x_nhwc, ((0, 0), (pad, pad), (pad, pad), (0, 0)))
    cols = []
    for kh in range(k):
        for kw in range(k):
            cols.append(
                xp[:, kh:kh + stride * ho:stride, kw:kw + stride * wo:stride, :])
    patches = jnp.concatenate(cols, axis=-1).reshape(n * ho * wo, k * k * c)
    patches = jnp.pad(patches, ((0, m1p - n * ho * wo), (0, kkp - k * k * c)))
    return patches.astype(jnp.bfloat16)


def _weight_to_mat(w_oihw, kkp):
    cout, cin, kh, kw = w_oihw.shape
    m = jnp.transpose(w_oihw, (2, 3, 1, 0)).reshape(kh * kw * cin, cout)
    return jnp.pad(m, ((0, kkp - kh * kw * cin), (0, 0)))


def _fold_bn(s, q, count, gamma_pad, beta_pad):
    mean = s / count
    var = jnp.maximum(q / count - mean * mean, 0.0)   # single-pass biased variance
    scale = gamma_pad * jax.lax.rsqrt(var + EPS)
    shift = beta_pad - mean * scale
    return scale, shift


def res_2d_forward(x_nchw, params, stride=2, k=3):
    """Pallas Res_2d.forward (diff branch: stride != 1 or Cin != Cout)."""
    pad = k // 2
    n, cin, h, w = x_nchw.shape
    cout = params["w1"].shape[0]
    cp1 = _round_up(cout, 128)        # lane width of h1 / conv2 / output slabs
    cp2 = _round_up(2 * cout, 128)    # lane width of the fused conv1|conv3 slab
    ho = (h + 2 * pad - k) // stride + 1
    wo = (w + 2 * pad - k) // stride + 1
    howo = ho * wo
    assert howo % 8 == 0, "Ho*Wo must be a multiple of 8"  # TODO(synk): pad odd spatials
    m1 = n * howo

    kk = k * k * cin
    kkp = _round_up(kk, 16)                        # bf16 sublane packing for weights
    tm = min(MAX_ROW_TILE, _round_up(m1, 8))       # stage-A row tile
    m1p = _round_up(m1, tm)                        # zero-row padding, exactly neutral

    # ---- stage A: fused conv_1 + conv_3 on the shared im2col patches --------
    x_nhwc = jnp.transpose(x_nchw, (0, 2, 3, 1))
    # TODO(synk): fold the im2col expansion into the Pallas kernel (shifted
    #             strided matmuls from the padded input) to drop this HBM pass.
    patches = _im2col_nhwc(x_nhwc, k, stride, pad, ho, wo, kkp, m1p)

    w13 = jnp.zeros((kkp, cp2), jnp.float32)
    w13 = w13.at[:, :cout].set(_weight_to_mat(params["w1"], kkp))
    w13 = w13.at[:, cout:2 * cout].set(_weight_to_mat(params["w3"], kkp))
    # Conv biases b1/b2/b3 are intentionally dropped: training-mode BatchNorm's
    # mean subtraction cancels them exactly (variance is unchanged).
    y13, s13p, q13p = matmul_with_stats(patches, w13.astype(jnp.bfloat16), tm)
    s13 = jnp.sum(s13p, axis=0, keepdims=True)
    q13 = jnp.sum(q13p, axis=0, keepdims=True)

    g13 = jnp.zeros((1, cp2), jnp.float32)
    g13 = g13.at[0, :cout].set(params["g1"]).at[0, cout:2 * cout].set(params["g3"])
    b13 = jnp.zeros((1, cp2), jnp.float32)
    b13 = b13.at[0, :cout].set(params["be1"]).at[0, cout:2 * cout].set(params["be3"])
    scale13, shift13 = _fold_bn(s13, q13, float(m1), g13, b13)

    h1, shortcut = stagea_apply(y13, scale13, shift13, cout, cp1, tm)

    # ---- stage B: conv_2 straight from the flat bf16 h1 (no padded copy) ----
    w2_t = jnp.transpose(params["w2"], (2, 3, 1, 0)).reshape(k * k, cout, cout)
    w2p = jnp.zeros((k * k, cp1, cp1), jnp.float32).at[:, :cout, :cout].set(w2_t)
    y2, s2p, q2p = conv2_with_stats(h1, w2p.astype(jnp.bfloat16), n, ho, wo, k)
    s2 = jnp.sum(s2p, axis=0, keepdims=True)
    q2 = jnp.sum(q2p, axis=0, keepdims=True)

    g2 = jnp.zeros((1, cp1), jnp.float32).at[0, :cout].set(params["g2"])
    b2 = jnp.zeros((1, cp1), jnp.float32).at[0, :cout].set(params["be2"])
    scale2, shift2 = _fold_bn(s2, q2, float(m1), g2, b2)

    sub = _pick_row_tile(howo)
    out_flat = final_apply(y2, scale2, shift2, shortcut, sub)

    out = out_flat.reshape(n, ho, wo, cp1)[..., :cout]
    return jnp.transpose(out, (0, 3, 1, 2))               # back to NCHW


# ---------------------------------------------------------------------------
# Pure-JAX reference (lax.conv, with biases) to verify the Pallas path.
# ---------------------------------------------------------------------------
def res_2d_reference(x, params, stride=2):
    def conv(x, w, b, s):
        y = jax.lax.conv_general_dilated(
            x, w, (s, s), ((1, 1), (1, 1)),
            dimension_numbers=("NCHW", "OIHW", "NCHW"))
        return y + b[None, :, None, None]

    def bn(y, g, be):
        mean = y.mean(axis=(0, 2, 3), keepdims=True)
        var = ((y - mean) ** 2).mean(axis=(0, 2, 3), keepdims=True)
        return ((y - mean) / jnp.sqrt(var + EPS)) * g[None, :, None, None] \
               + be[None, :, None, None]

    h = jax.nn.relu(bn(conv(x, params["w1"], params["b1"], stride),
                       params["g1"], params["be1"]))
    out = bn(conv(h, params["w2"], params["b2"], 1), params["g2"], params["be2"])
    sc = bn(conv(x, params["w3"], params["b3"], stride),
            params["g3"], params["be3"])
    return jax.nn.relu(out + sc)


if __name__ == "__main__":
    # Small shapes consistent with Res_2d(input_channels=4, output_channels=8)
    N, CIN, COUT, H, W, K, STRIDE = 2, 4, 8, 16, 16, 3, 2

    key = jax.random.PRNGKey(0)
    ks = jax.random.split(key, 13)

    params = {
        "w1": 0.1 * jax.random.normal(ks[0], (COUT, CIN, K, K), jnp.float32),
        "b1": 0.1 * jax.random.normal(ks[1], (COUT,), jnp.float32),
        "g1": 1.0 + 0.1 * jax.random.normal(ks[2], (COUT,), jnp.float32),
        "be1": 0.1 * jax.random.normal(ks[3], (COUT,), jnp.float32),
        "w2": 0.1 * jax.random.normal(ks[4], (COUT, COUT, K, K), jnp.float32),
        "b2": 0.1 * jax.random.normal(ks[5], (COUT,), jnp.float32),
        "g2": 1.0 + 0.1 * jax.random.normal(ks[6], (COUT,), jnp.float32),
        "be2": 0.1 * jax.random.normal(ks[7], (COUT,), jnp.float32),
        "w3": 0.1 * jax.random.normal(ks[8], (COUT, CIN, K, K), jnp.float32),
        "b3": 0.1 * jax.random.normal(ks[9], (COUT,), jnp.float32),
        "g3": 1.0 + 0.1 * jax.random.normal(ks[10], (COUT,), jnp.float32),
        "be3": 0.1 * jax.random.normal(ks[11], (COUT,), jnp.float32),
    }
    x = jax.random.normal(ks[12], (N, CIN, H, W), jnp.float32)

    fwd = jax.jit(lambda xx, pp: res_2d_forward(xx, pp, stride=STRIDE, k=K))
    out = jax.block_until_ready(fwd(x, params))

    ref = jax.block_until_ready(res_2d_reference(x, params, stride=STRIDE))
    assert out.shape == ref.shape == (N, COUT, H // STRIDE, W // STRIDE)
    # bf16 MXU operands on both conv paths -> slightly looser tolerance.
    np.testing.assert_allclose(np.asarray(out), np.asarray(ref),
                               rtol=3e-2, atol=3e-2)

    print("KERNEL_OK")
</pallas_src>

<mosaic_0001>
module attributes {stable_mosaic.version = 11 : i64} {
  func.func @_mm_stats_kernel(%arg0: i32, %arg1: memref<128x48xbf16, #tpu.memory_space<vmem>>, %arg2: memref<48x128xbf16, #tpu.memory_space<vmem>>, %arg3: memref<128x128xf32, #tpu.memory_space<vmem>>, %arg4: memref<8x128xf32, #tpu.memory_space<vmem>>, %arg5: memref<8x128xf32, #tpu.memory_space<vmem>>) attributes {dimension_semantics = [#tpu.dimension_semantics<parallel>], iteration_bounds = array<i64: 1>, scalar_prefetch = 0 : i64, scratch_operands = 0 : i64, tpu.core_type = #tpu.core_type<tc>, window_params = [{transform_indices = @transform_0, window_bounds = array<i64: 128, 48>}, {pipeline_mode = #tpu.pipeline_mode<synchronous>, transform_indices = @transform_1, window_bounds = array<i64: 48, 128>}, {transform_indices = @transform_2, window_bounds = array<i64: 128, 128>}, {transform_indices = @transform_3, window_bounds = array<i64: 8, 128>}, {transform_indices = @transform_4, window_bounds = array<i64: 8, 128>}]} {
    %c0 = arith.constant 0 : index
    %c0_0 = arith.constant 0 : index
    %0 = vector.load %arg1[%c0, %c0_0] : memref<128x48xbf16, #tpu.memory_space<vmem>>, vector<128x48xbf16>
    %c0_1 = arith.constant 0 : index
    %c0_2 = arith.constant 0 : index
    %1 = vector.load %arg2[%c0_1, %c0_2] : memref<48x128xbf16, #tpu.memory_space<vmem>>, vector<48x128xbf16>
    %cst = arith.constant dense<0.000000e+00> : vector<128x128xf32>
    %2 = tpu.matmul %0, %1, %cst {dimension_numbers = #tpu.dot_dimension_numbers<[1], [0], [0], [1], [0, 0, 1, 1], [], []>} : vector<128x48xbf16>, vector<48x128xbf16>, vector<128x128xf32> -> vector<128x128xf32>
    %c0_3 = arith.constant 0 : index
    %c0_4 = arith.constant 0 : index
    %3 = vector.load %arg3[%c0_3, %c0_4] : memref<128x128xf32, #tpu.memory_space<vmem>>, vector<128x128xf32>
    tpu.vector_store %arg3[%c0_3, %c0_4], %2 {strides = array<i32>} : memref<128x128xf32, #tpu.memory_space<vmem>>, vector<128x128xf32>,
    %4 = tpu.iota {dimensions = array<i32: 0>} : vector<8x128xi32>
    %c0_i32 = arith.constant 0 : i32
    %5 = vector.broadcast %c0_i32 : i32 to vector<8x128xi32>
    %6 = arith.cmpi eq, %4, %5 : vector<8x128xi32>
    %cst_5 = arith.constant dense<0.000000e+00> : vector<128xf32>
    %7 = vector.multi_reduction <add>, %2, %cst_5 [0] : vector<128x128xf32> to vector<128xf32>
    %8 = vector.shape_cast %7 : vector<128xf32> to vector<1x128xf32>
    %9 = vector.shape_cast %8 : vector<1x128xf32> to vector<1x128xf32>
    %10 = vector.broadcast %9 : vector<1x128xf32> to vector<8x128xf32>
    %cst_6 = arith.constant 0.000000e+00 : f32
    %11 = vector.broadcast %cst_6 : f32 to vector<8x128xf32>
    %12 = arith.select %6, %10, %11 : vector<8x128xi1>, vector<8x128xf32>
    %c0_i32_7 = arith.constant 0 : i32
    %13 = vector.broadcast %c0_i32_7 : i32 to vector<8x128xi32>
    %14 = arith.cmpi eq, %4, %13 : vector<8x128xi32>
    %15 = arith.mulf %2, %2 : vector<128x128xf32>
    %cst_8 = arith.constant dense<0.000000e+00> : vector<128xf32>
    %16 = vector.multi_reduction <add>, %15, %cst_8 [0] : vector<128x128xf32> to vector<128xf32>
    %17 = vector.shape_cast %16 : vector<128xf32> to vector<1x128xf32>
    %18 = vector.shape_cast %17 : vector<1x128xf32> to vector<1x128xf32>
    %19 = vector.broadcast %18 : vector<1x128xf32> to vector<8x128xf32>
    %cst_9 = arith.constant 0.000000e+00 : f32
    %20 = vector.broadcast %cst_9 : f32 to vector<8x128xf32>
    %21 = arith.select %14, %19, %20 : vector<8x128xi1>, vector<8x128xf32>
    %c0_10 = arith.constant 0 : index
    %c0_11 = arith.constant 0 : index
    %22 = vector.load %arg4[%c0_10, %c0_11] : memref<8x128xf32, #tpu.memory_space<vmem>>, vector<8x128xf32>
    tpu.vector_store %arg4[%c0_10, %c0_11], %12 {strides = array<i32>} : memref<8x128xf32, #tpu.memory_space<vmem>>, vector<8x128xf32>,
    %c0_12 = arith.constant 0 : index
    %c0_13 = arith.constant 0 : index
    %23 = vector.load %arg5[%c0_12, %c0_13] : memref<8x128xf32, #tpu.memory_space<vmem>>, vector<8x128xf32>
    tpu.vector_store %arg5[%c0_12, %c0_13], %21 {strides = array<i32>} : memref<8x128xf32, #tpu.memory_space<vmem>>, vector<8x128xf32>,
    return
  }
  func.func @transform_0(%arg0: i32) -> (i32, i32) {
    %c0_i32 = arith.constant 0 : i32
    %c0_i32_0 = arith.constant 0 : i32
    return %arg0, %c0_i32 : i32, i32
  }
  func.func @transform_1(%arg0: i32) -> (i32, i32) {
    %c0_i32 = arith.constant 0 : i32
    %c0_i32_0 = arith.constant 0 : i32
    %c0_i32_1 = arith.constant 0 : i32
    return %c0_i32, %c0_i32_0 : i32, i32
  }
  func.func @transform_2(%arg0: i32) -> (i32, i32) {
    %c0_i32 = arith.constant 0 : i32
    %c0_i32_0 = arith.constant 0 : i32
    return %arg0, %c0_i32 : i32, i32
  }
  func.func @transform_3(%arg0: i32) -> (i32, i32) {
    %c0_i32 = arith.constant 0 : i32
    %c0_i32_0 = arith.constant 0 : i32
    return %arg0, %c0_i32 : i32, i32
  }
  func.func @transform_4(%arg0: i32) -> (i32, i32) {
    %c0_i32 = arith.constant 0 : i32
    %c0_i32_0 = arith.constant 0 : i32
    return %arg0, %c0_i32 : i32, i32
  }
}

module attributes {stable_mosaic.version = 11 : i64} {
  func.func @kernel(%arg0: i32, %arg1: memref<128x128xf32, #tpu.memory_space<vmem>>, %arg2: memref<1x128xf32, #tpu.memory_space<vmem>>, %arg3: memref<1x128xf32, #tpu.memory_space<vmem>>, %arg4: memref<128x128xbf16, #tpu.memory_space<vmem>>, %arg5: memref<128x128xf32, #tpu.memory_space<vmem>>) attributes {dimension_semantics = [#tpu.dimension_semantics<parallel>], iteration_bounds = array<i64: 1>, scalar_prefetch = 0 : i64, scratch_operands = 0 : i64, tpu.core_type = #tpu.core_type<tc>, window_params = [{transform_indices = @transform_0, window_bounds = array<i64: 128, 128>}, {pipeline_mode = #tpu.pipeline_mode<synchronous>, transform_indices = @transform_1, window_bounds = array<i64: 1, 128>}, {pipeline_mode = #tpu.pipeline_mode<synchronous>, transform_indices = @transform_2, window_bounds = array<i64: 1, 128>}, {transform_indices = @transform_3, window_bounds = array<i64: 128, 128>}, {transform_indices = @transform_4, window_bounds = array<i64: 128, 128>}]} {
    %c0 = arith.constant 0 : index
    %c0_0 = arith.constant 0 : index
    %0 = vector.load %arg1[%c0, %c0_0] : memref<128x128xf32, #tpu.memory_space<vmem>>, vector<128x128xf32>
    %c0_1 = arith.constant 0 : index
    %c0_2 = arith.constant 0 : index
    %1 = vector.load %arg2[%c0_1, %c0_2] : memref<1x128xf32, #tpu.memory_space<vmem>>, vector<1x128xf32>
    %2 = vector.broadcast %1 : vector<1x128xf32> to vector<128x128xf32>
    %3 = arith.mulf %0, %2 : vector<128x128xf32>
    %c0_3 = arith.constant 0 : index
    %c0_4 = arith.constant 0 : index
    %4 = vector.load %arg3[%c0_3, %c0_4] : memref<1x128xf32, #tpu.memory_space<vmem>>, vector<1x128xf32>
    %5 = vector.broadcast %4 : vector<1x128xf32> to vector<128x128xf32>
    %6 = arith.addf %3, %5 : vector<128x128xf32>
    %cst = arith.constant 0.000000e+00 : f32
    %7 = vector.broadcast %cst : f32 to vector<128x128xf32>
    %8 = arith.maximumf %6, %7 : vector<128x128xf32>
    %9 = arith.truncf %8 : vector<128x128xf32> to vector<128x128xbf16>
    %c0_5 = arith.constant 0 : index
    %c0_6 = arith.constant 0 : index
    %10 = vector.load %arg4[%c0_5, %c0_6] : memref<128x128xbf16, #tpu.memory_space<vmem>>, vector<128x128xbf16>
    tpu.vector_store %arg4[%c0_5, %c0_6], %9 {strides = array<i32>} : memref<128x128xbf16, #tpu.memory_space<vmem>>, vector<128x128xbf16>,
    %11 = vector.extract_strided_slice %6 {offsets = [0, 8], sizes = [128, 120], strides = [1, 1]} : vector<128x128xf32> to vector<128x120xf32>
    %12 = vector.extract_strided_slice %6 {offsets = [0, 0], sizes = [128, 8], strides = [1, 1]} : vector<128x128xf32> to vector<128x8xf32>
    %13 = tpu.concatenate %11, %12 in 1 : vector<128x120xf32>, vector<128x8xf32> -> vector<128x128xf32>
    %c0_7 = arith.constant 0 : index
    %c0_8 = arith.constant 0 : index
    %14 = vector.load %arg5[%c0_7, %c0_8] : memref<128x128xf32, #tpu.memory_space<vmem>>, vector<128x128xf32>
    tpu.vector_store %arg5[%c0_7, %c0_8], %13 {strides = array<i32>} : memref<128x128xf32, #tpu.memory_space<vmem>>, vector<128x128xf32>,
    return
  }
  func.func @transform_0(%arg0: i32) -> (i32, i32) {
    %c0_i32 = arith.constant 0 : i32
    %c0_i32_0 = arith.constant 0 : i32
    return %arg0, %c0_i32 : i32, i32
  }
  func.func @transform_1(%arg0: i32) -> (i32, i32) {
    %c0_i32 = arith.constant 0 : i32
    %c0_i32_0 = arith.constant 0 : i32
    %c0_i32_1 = arith.constant 0 : i32
    return %c0_i32, %c0_i32_0 : i32, i32
  }
  func.func @transform_2(%arg0: i32) -> (i32, i32) {
    %c0_i32 = arith.constant 0 : i32
    %c0_i32_0 = arith.constant 0 : i32
    %c0_i32_1 = arith.constant 0 : i32
    return %c0_i32, %c0_i32_0 : i32, i32
  }
  func.func @transform_3(%arg0: i32) -> (i32, i32) {
    %c0_i32 = arith.constant 0 : i32
    %c0_i32_0 = arith.constant 0 : i32
    return %arg0, %c0_i32 : i32, i32
  }
  func.func @transform_4(%arg0: i32) -> (i32, i32) {
    %c0_i32 = arith.constant 0 : i32
    %c0_i32_0 = arith.constant 0 : i32
    return %arg0, %c0_i32 : i32, i32
  }
}

module attributes {stable_mosaic.version = 11 : i64} {
  func.func @kernel(%arg0: i32, %arg1: memref<64x128xbf16, #tpu.memory_space<vmem>>, %arg2: memref<9x128x128xbf16, #tpu.memory_space<vmem>>, %arg3: memref<64x128xf32, #tpu.memory_space<vmem>>, %arg4: memref<8x128xf32, #tpu.memory_space<vmem>>, %arg5: memref<8x128xf32, #tpu.memory_space<vmem>>, %arg6: memref<96x128xf32, #tpu.memory_space<vmem>>) attributes {dimension_semantics = [#tpu.dimension_semantics<parallel>], iteration_bounds = array<i64: 2>, scalar_prefetch = 0 : i64, scratch_operands = 1 : i64, tpu.core_type = #tpu.core_type<tc>, window_params = [{transform_indices = @transform_0, window_bounds = array<i64: 64, 128>}, {pipeline_mode = #tpu.pipeline_mode<synchronous>, transform_indices = @transform_1, window_bounds = array<i64: 9, 128, 128>}, {transform_indices = @transform_2, window_bounds = array<i64: 64, 128>}, {transform_indices = @transform_3, window_bounds = array<i64: 8, 128>}, {transform_indices = @transform_4, window_bounds = array<i64: 8, 128>}]} {
    %cst = arith.constant 0.000000e+00 : f32
    %0 = vector.broadcast %cst : f32 to vector<16x128xf32>
    %c0 = arith.constant 0 : index
    %c0_0 = arith.constant 0 : index
    %1 = vector.load %arg6[%c0, %c0_0] : memref<96x128xf32, #tpu.memory_space<vmem>>, vector<16x128xf32>
    tpu.vector_store %arg6[%c0, %c0_0], %0 {strides = array<i32>} : memref<96x128xf32, #tpu.memory_space<vmem>>, vector<16x128xf32>,
    %cst_1 = arith.constant 0.000000e+00 : f32
    %2 = vector.broadcast %cst_1 : f32 to vector<16x128xf32>
    %c80 = arith.constant 80 : index
    %c0_2 = arith.constant 0 : index
    %3 = vector.load %arg6[%c80, %c0_2] : memref<96x128xf32, #tpu.memory_space<vmem>>, vector<16x128xf32>
    tpu.vector_store %arg6[%c80, %c0_2], %2 {strides = array<i32>} : memref<96x128xf32, #tpu.memory_space<vmem>>, vector<16x128xf32>,
    %c0_3 = arith.constant 0 : index
    %c0_4 = arith.constant 0 : index
    %4 = vector.load %arg1[%c0_3, %c0_4] : memref<64x128xbf16, #tpu.memory_space<vmem>>, vector<64x128xbf16>
    %5 = arith.extf %4 : vector<64x128xbf16> to vector<64x128xf32>
    %c16 = arith.constant 16 : index
    %c0_5 = arith.constant 0 : index
    %6 = vector.load %arg6[%c16, %c0_5] : memref<96x128xf32, #tpu.memory_space<vmem>>, vector<64x128xf32>
    tpu.vector_store %arg6[%c16, %c0_5], %5 {strides = array<i32>} : memref<96x128xf32, #tpu.memory_space<vmem>>, vector<64x128xf32>,
    %7 = tpu.iota {dimensions = array<i32: 0>} : vector<64x1xi32>
    %c8_i32 = arith.constant 8 : i32
    %c0_i32 = arith.constant 0 : i32
    %8 = arith.cmpi eq, %c8_i32, %c0_i32 : i32
    %c1_i32 = arith.constant 1 : i32
    %9 = arith.select %8, %c1_i32, %c8_i32 : i32
    %10 = vector.broadcast %9 : i32 to vector<64x1xi32>
    %11 = arith.remsi %7, %10 : vector<64x1xi32>
    %c0_i32_6 = arith.constant 0 : i32
    %12 = vector.broadcast %c0_i32_6 : i32 to vector<64x1xi32>
    %13 = arith.cmpi ne, %11, %12 : vector<64x1xi32>
    %c0_i32_7 = arith.constant 0 : i32
    %14 = vector.broadcast %c0_i32_7 : i32 to vector<64x1xi32>
    %15 = arith.cmpi slt, %11, %14 : vector<64x1xi32>
    %c0_i32_8 = arith.constant 0 : i32
    %16 = arith.cmpi slt, %9, %c0_i32_8 : i32
    %17 = vector.broadcast %16 : i1 to vector<64x1xi1>
    %18 = vector.broadcast %17 : vector<64x1xi1> to vector<64x1xi1>
    %19 = arith.xori %15, %18 : vector<64x1xi1>
    %20 = arith.andi %19, %13 : vector<64x1xi1>
    %21 = vector.broadcast %9 : i32 to vector<64x1xi32>
    %22 = arith.addi %11, %21 : vector<64x1xi32>
    %23 = arith.select %20, %22, %11 : vector<64x1xi1>, vector<64x1xi32>
    %c7 = arith.constant 7 : index
    %c0_9 = arith.constant 0 : index
    %24 = vector.load %arg6[%c7, %c0_9] : memref<96x128xf32, #tpu.memory_space<vmem>>, vector<64x128xf32>
    %c-1_i32 = arith.constant -1 : i32
    %25 = vector.broadcast %c-1_i32 : i32 to vector<64x1xi32>
    %26 = arith.addi %23, %25 : vector<64x1xi32>
    %c0_i32_10 = arith.constant 0 : i32
    %27 = vector.broadcast %c0_i32_10 : i32 to vector<64x1xi32>
    %28 = arith.cmpi sge, %26, %27 : vector<64x1xi32>
    %c-1_i32_11 = arith.constant -1 : i32
    %29 = vector.broadcast %c-1_i32_11 : i32 to vector<64x1xi32>
    %30 = arith.addi %23, %29 : vector<64x1xi32>
    %c8_i32_12 = arith.constant 8 : i32
    %31 = vector.broadcast %c8_i32_12 : i32 to vector<64x1xi32>
    %32 = arith.cmpi slt, %30, %31 : vector<64x1xi32>
    %33 = arith.andi %28, %32 : vector<64x1xi1>
    %cst_13 = arith.constant 0.000000e+00 : f32
    %34 = vector.shape_cast %33 : vector<64x1xi1> to vector<64x1xi1>
    %35 = vector.broadcast %34 : vector<64x1xi1> to vector<64x128xi1>
    %36 = vector.broadcast %cst_13 : f32 to vector<64x128xf32>
    %37 = arith.select %35, %24, %36 : vector<64x128xi1>, vector<64x128xf32>
    %38 = arith.truncf %37 : vector<64x128xf32> to vector<64x128xbf16>
    %c0_14 = arith.constant 0 : index
    %c0_15 = arith.constant 0 : index
    %c0_16 = arith.constant 0 : index
    %39 = vector.load %arg2[%c0_14, %c0_15, %c0_16] : memref<9x128x128xbf16, #tpu.memory_space<vmem>>, vector<1x128x128xbf16>
    %40 = vector.shape_cast %39 : vector<1x128x128xbf16> to vector<128x128xbf16>
    %cst_17 = arith.constant dense<0.000000e+00> : vector<64x128xf32>
    %41 = tpu.matmul %38, %40, %cst_17 {dimension_numbers = #tpu.dot_dimension_numbers<[1], [0], [0], [1], [0, 0, 1, 1], [], []>} : vector<64x128xbf16>, vector<128x128xbf16>, vector<64x128xf32> -> vector<64x128xf32>
    %c0_18 = arith.constant 0 : index
    %c0_19 = arith.constant 0 : index
    %42 = vector.load %arg3[%c0_18, %c0_19] : memref<64x128xf32, #tpu.memory_space<vmem>>, vector<64x128xf32>
    tpu.vector_store %arg3[%c0_18, %c0_19], %41 {strides = array<i32>} : memref<64x128xf32, #tpu.memory_space<vmem>>, vector<64x128xf32>,
    %c8 = arith.constant 8 : index
    %c0_20 = arith.constant 0 : index
    %43 = vector.load %arg6[%c8, %c0_20] : memref<96x128xf32, #tpu.memory_space<vmem>>, vector<64x128xf32>
    %44 = arith.truncf %43 : vector<64x128xf32> to vector<64x128xbf16>
    %c1 = arith.constant 1 : index
    %c0_21 = arith.constant 0 : index
    %c0_22 = arith.constant 0 : index
    %45 = vector.load %arg2[%c1, %c0_21, %c0_22] : memref<9x128x128xbf16, #tpu.memory_space<vmem>>, vector<1x128x128xbf16>
    %46 = vector.shape_cast %45 : vector<1x128x128xbf16> to vector<128x128xbf16>
    %cst_23 = arith.constant dense<0.000000e+00> : vector<64x128xf32>
    %47 = tpu.matmul %44, %46, %cst_23 {dimension_numbers = #tpu.dot_dimension_numbers<[1], [0], [0], [1], [0, 0, 1, 1], [], []>} : vector<64x128xbf16>, vector<128x128xbf16>, vector<64x128xf32> -> vector<64x128xf32>
    %c0_24 = arith.constant 0 : index
    %c0_25 = arith.constant 0 : index
    %48 = vector.load %arg3[%c0_24, %c0_25] : memref<64x128xf32, #tpu.memory_space<vmem>>, vector<64x128xf32>
    %49 = arith.addf %48, %47 : vector<64x128xf32>
    %c0_26 = arith.constant 0 : index
    %c0_27 = arith.constant 0 : index
    %50 = vector.load %arg3[%c0_26, %c0_27] : memref<64x128xf32, #tpu.memory_space<vmem>>, vector<64x128xf32>
    tpu.vector_store %arg3[%c0_26, %c0_27], %49 {strides = array<i32>} : memref<64x128xf32, #tpu.memory_space<vmem>>, vector<64x128xf32>,
    %c9 = arith.constant 9 : index
    %c0_28 = arith.constant 0 : index
    %51 = vector.load %arg6[%c9, %c0_28] : memref<96x128xf32, #tpu.memory_space<vmem>>, vector<64x128xf32>
    %c1_i32_29 = arith.constant 1 : i32
    %52 = vector.broadcast %c1_i32_29 : i32 to vector<64x1xi32>
    %53 = arith.addi %23, %52 : vector<64x1xi32>
    %c0_i32_30 = arith.constant 0 : i32
    %54 = vector.broadcast %c0_i32_30 : i32 to vector<64x1xi32>
    %55 = arith.cmpi sge, %53, %54 : vector<64x1xi32>
    %c1_i32_31 = arith.constant 1 : i32
    %56 = vector.broadcast %c1_i32_31 : i32 to vector<64x1xi32>
    %57 = arith.addi %23, %56 : vector<64x1xi32>
    %c8_i32_32 = arith.constant 8 : i32
    %58 = vector.broadcast %c8_i32_32 : i32 to vector<64x1xi32>
    %59 = arith.cmpi slt, %57, %58 : vector<64x1xi32>
    %60 = arith.andi %55, %59 : vector<64x1xi1>
    %cst_33 = arith.constant 0.000000e+00 : f32
    %61 = vector.shape_cast %60 : vector<64x1xi1> to vector<64x1xi1>
    %62 = vector.broadcast %61 : vector<64x1xi1> to vector<64x128xi1>
    %63 = vector.broadcast %cst_33 : f32 to vector<64x128xf32>
    %64 = arith.select %62, %51, %63 : vector<64x128xi1>, vector<64x128xf32>
    %65 = arith.truncf %64 : vector<64x128xf32> to vector<64x128xbf16>
    %c2 = arith.constant 2 : index
    %c0_34 = arith.constant 0 : index
    %c0_35 = arith.constant 0 : index
    %66 = vector.load %arg2[%c2, %c0_34, %c0_35] : memref<9x128x128xbf16, #tpu.memory_space<vmem>>, vector<1x128x128xbf16>
    %67 = vector.shape_cast %66 : vector<1x128x128xbf16> to vector<128x128xbf16>
    %cst_36 = arith.constant dense<0.000000e+00> : vector<64x128xf32>
    %68 = tpu.matmul %65, %67, %cst_36 {dimension_numbers = #tpu.dot_dimension_numbers<[1], [0], [0], [1], [0, 0, 1, 1], [], []>} : vector<64x128xbf16>, vector<128x128xbf16>, vector<64x128xf32> -> vector<64x128xf32>
    %c0_37 = arith.constant 0 : index
    %c0_38 = arith.constant 0 : index
    %69 = vector.load %arg3[%c0_37, %c0_38] : memref<64x128xf32, #tpu.memory_space<vmem>>, vector<64x128xf32>
    %70 = arith.addf %69, %68 : vector<64x128xf32>
    %c0_39 = arith.constant 0 : index
    %c0_40 = arith.constant 0 : index
    %71 = vector.load %arg3[%c0_39, %c0_40] : memref<64x128xf32, #tpu.memory_space<vmem>>, vector<64x128xf32>
    tpu.vector_store %arg3[%c0_39, %c0_40], %70 {strides = array<i32>} : memref<64x128xf32, #tpu.memory_space<vmem>>, vector<64x128xf32>,
    %c15 = arith.constant 15 : index
    %c0_41 = arith.constant 0 : index
    %72 = vector.load %arg6[%c15, %c0_41] : memref<96x128xf32, #tpu.memory_space<vmem>>, vector<64x128xf32>
    %c-1_i32_42 = arith.constant -1 : i32
    %73 = vector.broadcast %c-1_i32_42 : i32 to vector<64x1xi32>
    %74 = arith.addi %23, %73 : vector<64x1xi32>
    %c0_i32_43 = arith.constant 0 : i32
    %75 = vector.broadcast %c0_i32_43 : i32 to vector<64x1xi32>
    %76 = arith.cmpi sge, %74, %75 : vector<64x1xi32>
    %c-1_i32_44 = arith.constant -1 : i32
    %77 = vector.broadcast %c-1_i32_44 : i32 to vector<64x1xi32>
    %78 = arith.addi %23, %77 : vector<64x1xi32>
    %c8_i32_45 = arith.constant 8 : i32
    %79 = vector.broadcast %c8_i32_45 : i32 to vector<64x1xi32>
    %80 = arith.cmpi slt, %78, %79 : vector<64x1xi32>
    %81 = arith.andi %76, %80 : vector<64x1xi1>
    %cst_46 = arith.constant 0.000000e+00 : f32
    %82 = vector.shape_cast %81 : vector<64x1xi1> to vector<64x1xi1>
    %83 = vector.broadcast %82 : vector<64x1xi1> to vector<64x128xi1>
    %84 = vector.broadcast %cst_46 : f32 to vector<64x128xf32>
    %85 = arith.select %83, %72, %84 : vector<64x128xi1>, vector<64x128xf32>
    %86 = arith.truncf %85 : vector<64x128xf32> to vector<64x128xbf16>
    %c3 = arith.constant 3 : index
    %c0_47 = arith.constant 0 : index
    %c0_48 = arith.constant 0 : index
    %87 = vector.load %arg2[%c3, %c0_47, %c0_48] : memref<9x128x128xbf16, #tpu.memory_space<vmem>>, vector<1x128x128xbf16>
    %88 = vector.shape_cast %87 : vector<1x128x128xbf16> to vector<128x128xbf16>
    %cst_49 = arith.constant dense<0.000000e+00> : vector<64x128xf32>
    %89 = tpu.matmul %86, %88, %cst_49 {dimension_numbers = #tpu.dot_dimension_numbers<[1], [0], [0], [1], [0, 0, 1, 1], [], []>} : vector<64x128xbf16>, vector<128x128xbf16>, vector<64x128xf32> -> vector<64x128xf32>
    %c0_50 = arith.constant 0 : index
    %c0_51 = arith.constant 0 : index
    %90 = vector.load %arg3[%c0_50, %c0_51] : memref<64x128xf32, #tpu.memory_space<vmem>>, vector<64x128xf32>
    %91 = arith.addf %90, %89 : vector<64x128xf32>
    %c0_52 = arith.constant 0 : index
    %c0_53 = arith.constant 0 : index
    %92 = vector.load %arg3[%c0_52, %c0_53] : memref<64x128xf32, #tpu.memory_space<vmem>>, vector<64x128xf32>
    tpu.vector_store %arg3[%c0_52, %c0_53], %91 {strides = array<i32>} : memref<64x128xf32, #tpu.memory_space<vmem>>, vector<64x128xf32>,
    %c16_54 = arith.constant 16 : index
    %c0_55 = arith.constant 0 : index
    %93 = vector.load %arg6[%c16_54, %c0_55] : memref<96x128xf32, #tpu.memory_space<vmem>>, vector<64x128xf32>
    %94 = arith.truncf %93 : vector<64x128xf32> to vector<64x128xbf16>
    %c4 = arith.constant 4 : index
    %c0_56 = arith.constant 0 : index
    %c0_57 = arith.constant 0 : index
    %95 = vector.load %arg2[%c4, %c0_56, %c0_57] : memref<9x128x128xbf16, #tpu.memory_space<vmem>>, vector<1x128x128xbf16>
    %96 = vector.shape_cast %95 : vector<1x128x128xbf16> to vector<128x128xbf16>
    %cst_58 = arith.constant dense<0.000000e+00> : vector<64x128xf32>
    %97 = tpu.matmul %94, %96, %cst_58 {dimension_numbers = #tpu.dot_dimension_numbers<[1], [0], [0], [1], [0, 0, 1, 1], [], []>} : vector<64x128xbf16>, vector<128x128xbf16>, vector<64x128xf32> -> vector<64x128xf32>
    %c0_59 = arith.constant 0 : index
    %c0_60 = arith.constant 0 : index
    %98 = vector.load %arg3[%c0_59, %c0_60] : memref<64x128xf32, #tpu.memory_space<vmem>>, vector<64x128xf32>
    %99 = arith.addf %98, %97 : vector<64x128xf32>
    %c0_61 = arith.constant 0 : index
    %c0_62 = arith.constant 0 : index
    %100 = vector.load %arg3[%c0_61, %c0_62] : memref<64x128xf32, #tpu.memory_space<vmem>>, vector<64x128xf32>
    tpu.vector_store %arg3[%c0_61, %c0_62], %99 {strides = array<i32>} : memref<64x128xf32, #tpu.memory_space<vmem>>, vector<64x128xf32>,
    %c17 = arith.constant 17 : index
    %c0_63 = arith.constant 0 : index
    %101 = vector.load %arg6[%c17, %c0_63] : memref<96x128xf32, #tpu.memory_space<vmem>>, vector<64x128xf32>
    %c1_i32_64 = arith.constant 1 : i32
    %102 = vector.broadcast %c1_i32_64 : i32 to vector<64x1xi32>
    %103 = arith.addi %23, %102 : vector<64x1xi32>
    %c0_i32_65 = arith.constant 0 : i32
    %104 = vector.broadcast %c0_i32_65 : i32 to vector<64x1xi32>
    %105 = arith.cmpi sge, %103, %104 : vector<64x1xi32>
    %c1_i32_66 = arith.constant 1 : i32
    %106 = vector.broadcast %c1_i32_66 : i32 to vector<64x1xi32>
    %107 = arith.addi %23, %106 : vector<64x1xi32>
    %c8_i32_67 = arith.constant 8 : i32
    %108 = vector.broadcast %c8_i32_67 : i32 to vector<64x1xi32>
    %109 = arith.cmpi slt, %107, %108 : vector<64x1xi32>
    %110 = arith.andi %105, %109 : vector<64x1xi1>
    %cst_68 = arith.constant 0.000000e+00 : f32
    %111 = vector.shape_cast %110 : vector<64x1xi1> to vector<64x1xi1>
    %112 = vector.broadcast %111 : vector<64x1xi1> to vector<64x128xi1>
    %113 = vector.broadcast %cst_68 : f32 to vector<64x128xf32>
    %114 = arith.select %112, %101, %113 : vector<64x128xi1>, vector<64x128xf32>
    %115 = arith.truncf %114 : vector<64x128xf32> to vector<64x128xbf16>
    %c5 = arith.constant 5 : index
    %c0_69 = arith.constant 0 : index
    %c0_70 = arith.constant 0 : index
    %116 = vector.load %arg2[%c5, %c0_69, %c0_70] : memref<9x128x128xbf16, #tpu.memory_space<vmem>>, vector<1x128x128xbf16>
    %117 = vector.shape_cast %116 : vector<1x128x128xbf16> to vector<128x128xbf16>
    %cst_71 = arith.constant dense<0.000000e+00> : vector<64x128xf32>
    %118 = tpu.matmul %115, %117, %cst_71 {dimension_numbers = #tpu.dot_dimension_numbers<[1], [0], [0], [1], [0, 0, 1, 1], [], []>} : vector<64x128xbf16>, vector<128x128xbf16>, vector<64x128xf32> -> vector<64x128xf32>
    %c0_72 = arith.constant 0 : index
    %c0_73 = arith.constant 0 : index
    %119 = vector.load %arg3[%c0_72, %c0_73] : memref<64x128xf32, #tpu.memory_space<vmem>>, vector<64x128xf32>
    %120 = arith.addf %119, %118 : vector<64x128xf32>
    %c0_74 = arith.constant 0 : index
    %c0_75 = arith.constant 0 : index
    %121 = vector.load %arg3[%c0_74, %c0_75] : memref<64x128xf32, #tpu.memory_space<vmem>>, vector<64x128xf32>
    tpu.vector_store %arg3[%c0_74, %c0_75], %120 {strides = array<i32>} : memref<64x128xf32, #tpu.memory_space<vmem>>, vector<64x128xf32>,
    %c23 = arith.constant 23 : index
    %c0_76 = arith.constant 0 : index
    %122 = vector.load %arg6[%c23, %c0_76] : memref<96x128xf32, #tpu.memory_space<vmem>>, vector<64x128xf32>
    %c-1_i32_77 = arith.constant -1 : i32
    %123 = vector.broadcast %c-1_i32_77 : i32 to vector<64x1xi32>
    %124 = arith.addi %23, %123 : vector<64x1xi32>
    %c0_i32_78 = arith.constant 0 : i32
    %125 = vector.broadcast %c0_i32_78 : i32 to vector<64x1xi32>
    %126 = arith.cmpi sge, %124, %125 : vector<64x1xi32>
    %c-1_i32_79 = arith.constant -1 : i32
    %127 = vector.broadcast %c-1_i32_79 : i32 to vector<64x1xi32>
    %128 = arith.addi %23, %127 : vector<64x1xi32>
    %c8_i32_80 = arith.constant 8 : i32
    %129 = vector.broadcast %c8_i32_80 : i32 to vector<64x1xi32>
    %130 = arith.cmpi slt, %128, %129 : vector<64x1xi32>
    %131 = arith.andi %126, %130 : vector<64x1xi1>
    %cst_81 = arith.constant 0.000000e+00 : f32
    %132 = vector.shape_cast %131 : vector<64x1xi1> to vector<64x1xi1>
    %133 = vector.broadcast %132 : vector<64x1xi1> to vector<64x128xi1>
    %134 = vector.broadcast %cst_81 : f32 to vector<64x128xf32>
    %135 = arith.select %133, %122, %134 : vector<64x128xi1>, vector<64x128xf32>
    %136 = arith.truncf %135 : vector<64x128xf32> to vector<64x128xbf16>
    %c6 = arith.constant 6 : index
    %c0_82 = arith.constant 0 : index
    %c0_83 = arith.constant 0 : index
    %137 = vector.load %arg2[%c6, %c0_82, %c0_83] : memref<9x128x128xbf16, #tpu.memory_space<vmem>>, vector<1x128x128xbf16>
    %138 = vector.shape_cast %137 : vector<1x128x128xbf16> to vector<128x128xbf16>
    %cst_84 = arith.constant dense<0.000000e+00> : vector<64x128xf32>
    %139 = tpu.matmul %136, %138, %cst_84 {dimension_numbers = #tpu.dot_dimension_numbers<[1], [0], [0], [1], [0, 0, 1, 1], [], []>} : vector<64x128xbf16>, vector<128x128xbf16>, vector<64x128xf32> -> vector<64x128xf32>
    %c0_85 = arith.constant 0 : index
    %c0_86 = arith.constant 0 : index
    %140 = vector.load %arg3[%c0_85, %c0_86] : memref<64x128xf32, #tpu.memory_space<vmem>>, vector<64x128xf32>
    %141 = arith.addf %140, %139 : vector<64x128xf32>
    %c0_87 = arith.constant 0 : index
    %c0_88 = arith.constant 0 : index
    %142 = vector.load %arg3[%c0_87, %c0_88] : memref<64x128xf32, #tpu.memory_space<vmem>>, vector<64x128xf32>
    tpu.vector_store %arg3[%c0_87, %c0_88], %141 {strides = array<i32>} : memref<64x128xf32, #tpu.memory_space<vmem>>, vector<64x128xf32>,
    %c24 = arith.constant 24 : index
    %c0_89 = arith.constant 0 : index
    %143 = vector.load %arg6[%c24, %c0_89] : memref<96x128xf32, #tpu.memory_space<vmem>>, vector<64x128xf32>
    %144 = arith.truncf %143 : vector<64x128xf32> to vector<64x128xbf16>
    %c7_90 = arith.constant 7 : index
    %c0_91 = arith.constant 0 : index
    %c0_92 = arith.constant 0 : index
    %145 = vector.load %arg2[%c7_90, %c0_91, %c0_92] : memref<9x128x128xbf16, #tpu.memory_space<vmem>>, vector<1x128x128xbf16>
    %146 = vector.shape_cast %145 : vector<1x128x128xbf16> to vector<128x128xbf16>
    %cst_93 = arith.constant dense<0.000000e+00> : vector<64x128xf32>
    %147 = tpu.matmul %144, %146, %cst_93 {dimension_numbers = #tpu.dot_dimension_numbers<[1], [0], [0], [1], [0, 0, 1, 1], [], []>} : vector<64x128xbf16>, vector<128x128xbf16>, vector<64x128xf32> -> vector<64x128xf32>
    %c0_94 = arith.constant 0 : index
    %c0_95 = arith.constant 0 : index
    %148 = vector.load %arg3[%c0_94, %c0_95] : memref<64x128xf32, #tpu.memory_space<vmem>>, vector<64x128xf32>
    %149 = arith.addf %148, %147 : vector<64x128xf32>
    %c0_96 = arith.constant 0 : index
    %c0_97 = arith.constant 0 : index
    %150 = vector.load %arg3[%c0_96, %c0_97] : memref<64x128xf32, #tpu.memory_space<vmem>>, vector<64x128xf32>
    tpu.vector_store %arg3[%c0_96, %c0_97], %149 {strides = array<i32>} : memref<64x128xf32, #tpu.memory_space<vmem>>, vector<64x128xf32>,
    %c25 = arith.constant 25 : index
    %c0_98 = arith.constant 0 : index
    %151 = vector.load %arg6[%c25, %c0_98] : memref<96x128xf32, #tpu.memory_space<vmem>>, vector<64x128xf32>
    %c1_i32_99 = arith.constant 1 : i32
    %152 = vector.broadcast %c1_i32_99 : i32 to vector<64x1xi32>
    %153 = arith.addi %23, %152 : vector<64x1xi32>
    %c0_i32_100 = arith.constant 0 : i32
    %154 = vector.broadcast %c0_i32_100 : i32 to vector<64x1xi32>
    %155 = arith.cmpi sge, %153, %154 : vector<64x1xi32>
    %c1_i32_101 = arith.constant 1 : i32
    %156 = vector.broadcast %c1_i32_101 : i32 to vector<64x1xi32>
    %157 = arith.addi %23, %156 : vector<64x1xi32>
    %c8_i32_102 = arith.constant 8 : i32
    %158 = vector.broadcast %c8_i32_102 : i32 to vector<64x1xi32>
    %159 = arith.cmpi slt, %157, %158 : vector<64x1xi32>
    %160 = arith.andi %155, %159 : vector<64x1xi1>
    %cst_103 = arith.constant 0.000000e+00 : f32
    %161 = vector.shape_cast %160 : vector<64x1xi1> to vector<64x1xi1>
    %162 = vector.broadcast %161 : vector<64x1xi1> to vector<64x128xi1>
    %163 = vector.broadcast %cst_103 : f32 to vector<64x128xf32>
    %164 = arith.select %162, %151, %163 : vector<64x128xi1>, vector<64x128xf32>
    %165 = arith.truncf %164 : vector<64x128xf32> to vector<64x128xbf16>
    %c8_104 = arith.constant 8 : index
    %c0_105 = arith.constant 0 : index
    %c0_106 = arith.constant 0 : index
    %166 = vector.load %arg2[%c8_104, %c0_105, %c0_106] : memref<9x128x128xbf16, #tpu.memory_space<vmem>>, vector<1x128x128xbf16>
    %167 = vector.shape_cast %166 : vector<1x128x128xbf16> to vector<128x128xbf16>
    %cst_107 = arith.constant dense<0.000000e+00> : vector<64x128xf32>
    %168 = tpu.matmul %165, %167, %cst_107 {dimension_numbers = #tpu.dot_dimension_numbers<[1], [0], [0], [1], [0, 0, 1, 1], [], []>} : vector<64x128xbf16>, vector<128x128xbf16>, vector<64x128xf32> -> vector<64x128xf32>
    %c0_108 = arith.constant 0 : index
    %c0_109 = arith.constant 0 : index
    %169 = vector.load %arg3[%c0_108, %c0_109] : memref<64x128xf32, #tpu.memory_space<vmem>>, vector<64x128xf32>
    %170 = arith.addf %169, %168 : vector<64x128xf32>
    %c0_110 = arith.constant 0 : index
    %c0_111 = arith.constant 0 : index
    %171 = vector.load %arg3[%c0_110, %c0_111] : memref<64x128xf32, #tpu.memory_space<vmem>>, vector<64x128xf32>
    tpu.vector_store %arg3[%c0_110, %c0_111], %170 {strides = array<i32>} : memref<64x128xf32, #tpu.memory_space<vmem>>, vector<64x128xf32>,
    %c0_112 = arith.constant 0 : index
    %c0_113 = arith.constant 0 : index
    %172 = vector.load %arg3[%c0_112, %c0_113] : memref<64x128xf32, #tpu.memory_space<vmem>>, vector<64x128xf32>
    %173 = tpu.iota {dimensions = array<i32: 0>} : vector<8x128xi32>
    %c0_i32_114 = arith.constant 0 : i32
    %174 = vector.broadcast %c0_i32_114 : i32 to vector<8x128xi32>
    %175 = arith.cmpi eq, %173, %174 : vector<8x128xi32>
    %cst_115 = arith.constant dense<0.000000e+00> : vector<128xf32>
    %176 = vector.multi_reduction <add>, %172, %cst_115 [0] : vector<64x128xf32> to vector<128xf32>
    %177 = vector.shape_cast %176 : vector<128xf32> to vector<1x128xf32>
    %178 = vector.shape_cast %177 : vector<1x128xf32> to vector<1x128xf32>
    %179 = vector.broadcast %178 : vector<1x128xf32> to vector<8x128xf32>
    %cst_116 = arith.constant 0.000000e+00 : f32
    %180 = vector.broadcast %cst_116 : f32 to vector<8x128xf32>
    %181 = arith.select %175, %179, %180 : vector<8x128xi1>, vector<8x128xf32>
    %c0_i32_117 = arith.constant 0 : i32
    %182 = vector.broadcast %c0_i32_117 : i32 to vector<8x128xi32>
    %183 = arith.cmpi eq, %173, %182 : vector<8x128xi32>
    %184 = arith.mulf %172, %172 : vector<64x128xf32>
    %cst_118 = arith.constant dense<0.000000e+00> : vector<128xf32>
    %185 = vector.multi_reduction <add>, %184, %cst_118 [0] : vector<64x128xf32> to vector<128xf32>
    %186 = vector.shape_cast %185 : vector<128xf32> to vector<1x128xf32>
    %187 = vector.shape_cast %186 : vector<1x128xf32> to vector<1x128xf32>
    %188 = vector.broadcast %187 : vector<1x128xf32> to vector<8x128xf32>
    %cst_119 = arith.constant 0.000000e+00 : f32
    %189 = vector.broadcast %cst_119 : f32 to vector<8x128xf32>
    %190 = arith.select %183, %188, %189 : vector<8x128xi1>, vector<8x128xf32>
    %c0_120 = arith.constant 0 : index
    %c0_121 = arith.constant 0 : index
    %191 = vector.load %arg4[%c0_120, %c0_121] : memref<8x128xf32, #tpu.memory_space<vmem>>, vector<8x128xf32>
    tpu.vector_store %arg4[%c0_120, %c0_121], %181 {strides = array<i32>} : memref<8x128xf32, #tpu.memory_space<vmem>>, vector<8x128xf32>,
    %c0_122 = arith.constant 0 : index
    %c0_123 = arith.constant 0 : index
    %192 = vector.load %arg5[%c0_122, %c0_123] : memref<8x128xf32, #tpu.memory_space<vmem>>, vector<8x128xf32>
    tpu.vector_store %arg5[%c0_122, %c0_123], %190 {strides = array<i32>} : memref<8x128xf32, #tpu.memory_space<vmem>>, vector<8x128xf32>,
    return
  }
  func.func @transform_0(%arg0: i32) -> (i32, i32) {
    %c0_i32 = arith.constant 0 : i32
    %c0_i32_0 = arith.constant 0 : i32
    return %arg0, %c0_i32 : i32, i32
  }
  func.func @transform_1(%arg0: i32) -> (i32, i32, i32) {
    %c0_i32 = arith.constant 0 : i32
    %c0_i32_0 = arith.constant 0 : i32
    %c0_i32_1 = arith.constant 0 : i32
    %c0_i32_2 = arith.constant 0 : i32
    return %c0_i32, %c0_i32_0, %c0_i32_1 : i32, i32, i32
  }
  func.func @transform_2(%arg0: i32) -> (i32, i32) {
    %c0_i32 = arith.constant 0 : i32
    %c0_i32_0 = arith.constant 0 : i32
    return %arg0, %c0_i32 : i32, i32
  }
  func.func @transform_3(%arg0: i32) -> (i32, i32) {
    %c0_i32 = arith.constant 0 : i32
    %c0_i32_0 = arith.constant 0 : i32
    return %arg0, %c0_i32 : i32, i32
  }
  func.func @transform_4(%arg0: i32) -> (i32, i32) {
    %c0_i32 = arith.constant 0 : i32
    %c0_i32_0 = arith.constant 0 : i32
    return %arg0, %c0_i32 : i32, i32
  }
}

module attributes {stable_mosaic.version = 11 : i64} {
  func.func @_final_apply_kernel(%arg0: i32, %arg1: memref<64x128xf32, #tpu.memory_space<vmem>>, %arg2: memref<1x128xf32, #tpu.memory_space<vmem>>, %arg3: memref<1x128xf32, #tpu.memory_space<vmem>>, %arg4: memref<64x128xf32, #tpu.memory_space<vmem>>, %arg5: memref<64x128xf32, #tpu.memory_space<vmem>>) attributes {dimension_semantics = [#tpu.dimension_semantics<parallel>], iteration_bounds = array<i64: 2>, scalar_prefetch = 0 : i64, scratch_operands = 0 : i64, tpu.core_type = #tpu.core_type<tc>, window_params = [{transform_indices = @transform_0, window_bounds = array<i64: 64, 128>}, {pipeline_mode = #tpu.pipeline_mode<synchronous>, transform_indices = @transform_1, window_bounds = array<i64: 1, 128>}, {pipeline_mode = #tpu.pipeline_mode<synchronous>, transform_indices = @transform_2, window_bounds = array<i64: 1, 128>}, {transform_indices = @transform_3, window_bounds = array<i64: 64, 128>}, {transform_indices = @transform_4, window_bounds = array<i64: 64, 128>}]} {
    %c0 = arith.constant 0 : index
    %c0_0 = arith.constant 0 : index
    %0 = vector.load %arg1[%c0, %c0_0] : memref<64x128xf32, #tpu.memory_space<vmem>>, vector<64x128xf32>
    %c0_1 = arith.constant 0 : index
    %c0_2 = arith.constant 0 : index
    %1 = vector.load %arg2[%c0_1, %c0_2] : memref<1x128xf32, #tpu.memory_space<vmem>>, vector<1x128xf32>
    %2 = vector.broadcast %1 : vector<1x128xf32> to vector<64x128xf32>
    %3 = arith.mulf %0, %2 : vector<64x128xf32>
    %c0_3 = arith.constant 0 : index
    %c0_4 = arith.constant 0 : index
    %4 = vector.load %arg3[%c0_3, %c0_4] : memref<1x128xf32, #tpu.memory_space<vmem>>, vector<1x128xf32>
    %5 = vector.broadcast %4 : vector<1x128xf32> to vector<64x128xf32>
    %6 = arith.addf %3, %5 : vector<64x128xf32>
    %c0_5 = arith.constant 0 : index
    %c0_6 = arith.constant 0 : index
    %7 = vector.load %arg4[%c0_5, %c0_6] : memref<64x128xf32, #tpu.memory_space<vmem>>, vector<64x128xf32>
    %8 = arith.addf %6, %7 : vector<64x128xf32>
    %cst = arith.constant 0.000000e+00 : f32
    %9 = vector.broadcast %cst : f32 to vector<64x128xf32>
    %10 = arith.maximumf %8, %9 : vector<64x128xf32>
    %c0_7 = arith.constant 0 : index
    %c0_8 = arith.constant 0 : index
    %11 = vector.load %arg5[%c0_7, %c0_8] : memref<64x128xf32, #tpu.memory_space<vmem>>, vector<64x128xf32>
    tpu.vector_store %arg5[%c0_7, %c0_8], %10 {strides = array<i32>} : memref<64x128xf32, #tpu.memory_space<vmem>>, vector<64x128xf32>,
    return
  }
  func.func @transform_0(%arg0: i32) -> (i32, i32) {
    %c0_i32 = arith.constant 0 : i32
    %c0_i32_0 = arith.constant 0 : i32
    return %arg0, %c0_i32 : i32, i32
  }
  func.func @transform_1(%arg0: i32) -> (i32, i32) {
    %c0_i32 = arith.constant 0 : i32
    %c0_i32_0 = arith.constant 0 : i32
    %c0_i32_1 = arith.constant 0 : i32
    return %c0_i32, %c0_i32_0 : i32, i32
  }
  func.func @transform_2(%arg0: i32) -> (i32, i32) {
    %c0_i32 = arith.constant 0 : i32
    %c0_i32_0 = arith.constant 0 : i32
    %c0_i32_1 = arith.constant 0 : i32
    return %c0_i32, %c0_i32_0 : i32, i32
  }
  func.func @transform_3(%arg0: i32) -> (i32, i32) {
    %c0_i32 = arith.constant 0 : i32
    %c0_i32_0 = arith.constant 0 : i32
    return %arg0, %c0_i32 : i32, i32
  }
  func.func @transform_4(%arg0: i32) -> (i32, i32) {
    %c0_i32 = arith.constant 0 : i32
    %c0_i32_0 = arith.constant 0 : i32
    return %arg0, %c0_i32 : i32, i32
  }
}

</mosaic_0001>

<bundles_post_ra>
// kernel: _lambda_.4
= control target key start
LH: loop header
LB: loop body
LE: loop exit
PB: predicated region body
PF: predicated region fallthrough
CT: control target
= control target key end

     0   :  { %vm95_vm0 = vcmask 392192   ;;  %s499_s1 = inlined_call_operand.vmem [shape: bf16[48,128], index: 1, kind: input, shape index: {}]   ;;  %s500_s0 = inlined_call_operand.vmem [shape: bf16[128,48], index: 0, kind: input, shape index: {}]   ;;  %s501_s2 = inlined_call_operand.vmem [shape: f32[128,128], index: 2, kind: output, shape index: {0}]   ;;  %s502_s3 = inlined_call_operand.vmem [shape: f32[8,128], index: 3, kind: output, shape index: {1}]   ;;  %s503_s4 = inlined_call_operand.vmem [shape: f32[8,128], index: 4, kind: output, shape index: {2}]  }
   0x1   :  { %v368_v0 = vld [vmem:[%s499_s1 + $0x10] sm:$0xff]   ;;  %v369_v1 = vld [vmem:[%s499_s1 + $0x8] sm:$0xff]   ;;  %v371_v2 = vld [vmem:[%s500_s0] sm:$0xff]  }
   0x2   :  { %340 = vmatprep.subr.bf16.mxu0 %v368_v0  ;;  %362 = vmatprep.subr.bf16.mxu1 %v368_v0  ;;  %v370_v3 = vld [vmem:[%s499_s1] sm:$0xff]   ;;  %v372_v5 = vld [vmem:[%s500_s0 + $0x8] sm:$0xff]   ;;  %v373_v7 = vld [vmem:[%s500_s0 + $0x10] sm:$0xff]  }
   0x3   :  { %341 = vmatpush3.bf16.msra.mxu0 %v368_v0  ;;  %365 = vmatpush3.bf16.msra.mxu1 %v368_v0  ;;  %v375_v4 = vld [vmem:[%s500_s0 + $0x20] sm:$0xff]   ;;  %v376_v6 = vld [vmem:[%s500_s0 + $0x28] sm:$0xff]   ;;  %v377_v8 = vld [vmem:[%s500_s0 + $0x30] sm:$0xff]  }
   0x4   :  { %342 = vmatprep.subr.bf16.mxu0 %v369_v1  ;;  %363 = vmatprep.subr.bf16.mxu1 %v369_v1  ;;  %v374_v9 = vld [vmem:[%s500_s0 + $0x18] sm:$0xff]  }
   0x5   :  { %346 = vmatprep.mubr.msk.bf16.mxu0 %vm95_vm0, %v371_v2  ;;  %354 = vmatprep.mubr.msk.bf16.mxu1 %vm95_vm0, %v375_v4  ;;  %v378_v10 = vld [vmem:[%s500_s0 + $0x38] sm:$0xff]  }
   0x7   :  { %343 = vmatpush3.bf16.msra.mxu0 %v369_v1  ;;  %366 = vmatpush3.bf16.msra.mxu1 %v369_v1 }
   0x8   :  { %344 = vmatprep.subr.bf16.mxu0 %v370_v3  ;;  %364 = vmatprep.subr.bf16.mxu1 %v370_v3 }
   0xb   :  { %345 = vmatpush3.bf16.msra.mxu0 %v370_v3  ;;  %367 = vmatpush3.bf16.msra.mxu1 %v370_v3 }
   0xe   :  { %347 = vmatmul.mubr.msk.bf16.vlgmr.msra.gmra.mxu0 %vm95_vm0, %v372_v5  ;;  %355 = vmatmul.mubr.msk.bf16.vlgmr.msra.gmra.mxu1 %vm95_vm0, %v376_v6 }
   0xf   :  { %350 = vmatprep.mubr.msk.bf16.mxu0 %vm95_vm0, %v373_v7  ;;  %358 = vmatprep.mubr.msk.bf16.mxu1 %vm95_vm0, %v377_v8 }
  0x16   :  { %351 = vmatmul.mubr.msk.bf16.gmra.mxu0 %vm95_vm0, %v374_v9  ;;  %359 = vmatmul.mubr.msk.bf16.gmra.mxu1 %vm95_vm0, %v378_v10  ;;  %v233_v10 = vlaneseq }
  0xce   :  { %v348_v11 = vpop.f32.mrf.mxu0  ;;  %v356_v12 = vpop.f32.mrf.mxu1 }
  0xcf   :  { %219 = vst [vmem:[%s501_s2 + $0x10] sm:$0xff] %v348_v11  ;;  %227 = vst [vmem:[%s501_s2 + $0x50] sm:$0xff] %v356_v12  ;;  %v260_v24 = vmul.f32 %v348_v11, %v348_v11  ;;  %v268_v54 = vmul.f32 %v356_v12, %v356_v12 }
  0xd0   :  { %v154_v13 = vpop.f32.mrf.mxu0  ;;  %v186_v14 = vpop.f32.mrf.mxu1 }
  0xd1   :  { %217 = vst [vmem:[%s501_s2] sm:$0xff] %v154_v13  ;;  %225 = vst [vmem:[%s501_s2 + $0x40] sm:$0xff] %v186_v14  ;;  %v258_v19 = vmul.f32 %v154_v13, %v154_v13  ;;  %v266_v48 = vmul.f32 %v186_v14, %v186_v14 }
  0xd2   :  { %v349_v15 = vpop.f32.mrf.mxu0  ;;  %v357_v16 = vpop.f32.mrf.mxu1 }
  0xd3   :  { %220 = vst [vmem:[%s501_s2 + $0x18] sm:$0xff] %v349_v15  ;;  %228 = vst [vmem:[%s501_s2 + $0x58] sm:$0xff] %v357_v16  ;;  %v261_v29 = vmul.f32 %v349_v15, %v349_v15  ;;  %v269_v57 = vmul.f32 %v357_v16, %v357_v16 }
  0xd4   :  { %v157_v17 = vpop.f32.mrf.mxu0  ;;  %v189_v18 = vpop.f32.mrf.mxu1 }
  0xd5   :  { %218 = vst [vmem:[%s501_s2 + $0x8] sm:$0xff] %v157_v17  ;;  %v236_v20 = vadd.f32 %v157_v17, %v154_v13  ;;  %v259_v21 = vmul.f32 %v157_v17, %v157_v17  ;;  %226 = vst [vmem:[%s501_s2 + $0x48] sm:$0xff] %v189_v18  ;;  %v267_v52 = vmul.f32 %v189_v18, %v189_v18 }
  0xd6   :  { %v352_v22 = vpop.f32.mrf.mxu0  ;;  %v360_v23 = vpop.f32.mrf.mxu1 }
  0xd7   :  { %v237_v25 = vadd.f32 %v348_v11, %v236_v20  ;;  %v274_v26 = vadd.f32 %v259_v21, %v258_v19  ;;  %223 = vst [vmem:[%s501_s2 + $0x30] sm:$0xff] %v352_v22  ;;  %231 = vst [vmem:[%s501_s2 + $0x70] sm:$0xff] %v360_v23  ;;  %v264_v42 = vmul.f32 %v352_v22, %v352_v22 }
  0xd8   :  { %v170_v27 = vpop.f32.mrf.mxu0  ;;  %v202_v28 = vpop.f32.mrf.mxu1  ;;  %v272_v2 = vmul.f32 %v360_v23, %v360_v23 }
  0xd9   :  { %v275_v30 = vadd.f32 %v274_v26, %v260_v24  ;;  %221 = vst [vmem:[%s501_s2 + $0x20] sm:$0xff] %v170_v27  ;;  %v238_v31 = vadd.f32 %v349_v15, %v237_v25  ;;  %229 = vst [vmem:[%s501_s2 + $0x60] sm:$0xff] %v202_v28  ;;  %v262_v35 = vmul.f32 %v170_v27, %v170_v27  ;;  %v234_v15 = vshrl.u32 %v233_v10, 7 }
  0xda   :  { %v353_v32 = vpop.f32.mrf.mxu0  ;;  %v361_v33 = vpop.f32.mrf.mxu1  ;;  %v270_v61 = vmul.f32 %v202_v28, %v202_v28 }
  0xdb   :  { %v239_v34 = vadd.f32 %v238_v31, %v170_v27  ;;  %v276_v36 = vadd.f32 %v275_v30, %v261_v29  ;;  %224 = vst [vmem:[%s501_s2 + $0x38] sm:$0xff] %v353_v32  ;;  %232 = vst [vmem:[%s501_s2 + $0x78] sm:$0xff] %v361_v33  ;;  %v265_v45 = vmul.f32 %v353_v32, %v353_v32  ;;  %vm235_vm1 = vcmp.eq.s32.totalorder %v234_v15, 0 }
  0xdc   :  { %v173_v37 = vpop.f32.mrf.mxu0  ;;  %v205_v38 = vpop.f32.mrf.mxu1  ;;  %v273_v5 = vmul.f32 %v361_v33, %v361_v33 }
  0xdd   :  { %v277_v39 = vadd.f32 %v276_v36, %v262_v35  ;;  %222 = vst [vmem:[%s501_s2 + $0x28] sm:$0xff] %v173_v37  ;;  %v240_v40 = vadd.f32 %v239_v34, %v173_v37  ;;  %v263_v41 = vmul.f32 %v173_v37, %v173_v37  ;;  %230 = vst [vmem:[%s501_s2 + $0x68] sm:$0xff] %v205_v38 }
  0xde   :  { %v271_v1 = vmul.f32 %v205_v38, %v205_v38 }
  0xdf   :  { %v241_v43 = vadd.f32 %v352_v22, %v240_v40  ;;  %v278_v44 = vadd.f32 %v277_v39, %v263_v41 }
  0xe1   :  { %v242_v46 = vadd.f32 %v353_v32, %v241_v43  ;;  %v279_v47 = vadd.f32 %v278_v44, %v264_v42 }
  0xe3   :  { %v280_v49 = vadd.f32 %v279_v47, %v265_v45  ;;  %v243_v50 = vadd.f32 %v242_v46, %v186_v14 }
  0xe5   :  { %v244_v51 = vadd.f32 %v243_v50, %v189_v18  ;;  %v281_v53 = vadd.f32 %v280_v49, %v266_v48 }
  0xe7   :  { %v245_v55 = vadd.f32 %v356_v12, %v244_v51  ;;  %v282_v56 = vadd.f32 %v281_v53, %v267_v52 }
  0xe9   :  { %v283_v58 = vadd.f32 %v282_v56, %v268_v54  ;;  %v246_v59 = vadd.f32 %v357_v16, %v245_v55 }
  0xeb   :  { %v247_v60 = vadd.f32 %v246_v59, %v202_v28  ;;  %v284_v62 = vadd.f32 %v283_v58, %v269_v57 }
  0xed   :  { %v285_v63 = vadd.f32 %v284_v62, %v270_v61  ;;  %v248_v0 = vadd.f32 %v247_v60, %v205_v38 }
  0xef   :  { %v249_v3 = vadd.f32 %v360_v23, %v248_v0  ;;  %v286_v4 = vadd.f32 %v285_v63, %v271_v1 }
  0xf1   :  { %v250_v6 = vadd.f32 %v361_v33, %v249_v3  ;;  %v287_v7 = vadd.f32 %v286_v4, %v272_v2 }
  0xf3   :  { %v251_v8 = vrot.slane %v250_v6, 4  ;;  %v288_v9 = vadd.f32 %v287_v7, %v273_v5 }
  0xf5   :  { %v252_v11 = vadd.f32 %v251_v8, %v250_v6  ;;  %v289_v12 = vrot.slane %v288_v9, 4 }
  0xf7   :  { %v253_v13 = vrot.slane %v252_v11, 2  ;;  %v290_v14 = vadd.f32 %v289_v12, %v288_v9 }
  0xf9   :  { %v254_v16 = vadd.f32 %v253_v13, %v252_v11  ;;  %v291_v17 = vrot.slane %v290_v14, 2 }
  0xfb   :  { %v255_v18 = vrot.slane %v254_v16, 1  ;;  %v292_v19 = vadd.f32 %v291_v17, %v290_v14 }
  0xfd   :  { %v256_v20 = vadd.f32 %v255_v18, %v254_v16  ;;  %v293_v21 = vrot.slane %v292_v19, 1 }
  0xff   :  { %v257_v22 = vsel %vm235_vm1, %v256_v20, 0.0  ;;  %v294_v23 = vadd.f32 %v293_v21, %v292_v19 }
 0x100   :  { %296 = vst [vmem:[%s502_s3] sm:$0xff] %v257_v22 }
 0x101   :  { %v295_v24 = vsel %vm235_vm1, %v294_v23, 0.0 }
 0x102   :  { %297 = vst [vmem:[%s503_s4] sm:$0xff] %v295_v24 }

// kernel: _lambda_.5
= control target key start
LH: loop header
LB: loop body
LE: loop exit
PB: predicated region body
PF: predicated region fallthrough
CT: control target
= control target key end

     0   :  { %s344_s9 = smov 120   ;;  %s548_s0 = inlined_call_operand.vmem [shape: f32[128,128], index: 0, kind: input, shape index: {}]   ;;  %s549_s1 = inlined_call_operand.vmem [shape: f32[1,128], index: 1, kind: input, shape index: {}]   ;;  %s550_s2 = inlined_call_operand.vmem [shape: f32[1,128], index: 2, kind: input, shape index: {}]   ;;  %s551_s3 = inlined_call_operand.vmem [shape: bf16[128,128], index: 3, kind: output, shape index: {0}]   ;;  %s552_s4 = inlined_call_operand.vmem [shape: f32[128,128], index: 4, kind: output, shape index: {1}]  }
   0x1   :  { %v18_v0 = vld [vmem:[%s548_s0 + $0x10] sm:$0xff]  ;;  %v376_v1 = vld [vmem:[%s549_s1] ss:$0 sm:$0xff]  ;;  %v19_v5 = vld [vmem:[%s548_s0 + $0x18] sm:$0xff] }
   0x2   :  { %v381_v2 = vld [vmem:[%s550_s2] ss:$0 sm:$0xff]  ;;  %v41_v3 = vmul.f32 %v376_v1, %v18_v0  ;;  %v17_v6 = vld [vmem:[%s548_s0 + $0x8] sm:$0xff]  ;;  %v42_v8 = vmul.f32 %v376_v1, %v19_v5  ;;  %v23_v12 = vld [vmem:[%s548_s0 + $0x38] sm:$0xff] }
   0x3   :  { %v16_v4 = vld [vmem:[%s548_s0] sm:$0xff]  ;;  %v40_v9 = vmul.f32 %v376_v1, %v17_v6  ;;  %v21_v10 = vld [vmem:[%s548_s0 + $0x28] sm:$0xff]  ;;  %v46_v16 = vmul.f32 %v376_v1, %v23_v12  ;;  %v22_v17 = vld [vmem:[%s548_s0 + $0x30] sm:$0xff] }
   0x4   :  { %v39_v7 = vmul.f32 %v376_v1, %v16_v4  ;;  %v20_v11 = vld [vmem:[%s548_s0 + $0x20] sm:$0xff]  ;;  %v64_v13 = vadd.f32 %v381_v2, %v41_v3  ;;  %v44_v14 = vmul.f32 %v376_v1, %v21_v10  ;;  %v65_v19 = vadd.f32 %v381_v2, %v42_v8  ;;  %v25_v22 = vld [vmem:[%s548_s0 + $0x48] sm:$0xff]  ;;  %v27_v32 = vld [vmem:[%s548_s0 + $0x58] sm:$0xff] }
   0x5   :  { %v43_v15 = vmul.f32 %v376_v1, %v20_v11  ;;  %v63_v20 = vadd.f32 %v381_v2, %v40_v9  ;;  %v45_v21 = vmul.f32 %v376_v1, %v22_v17  ;;  %v69_v26 = vadd.f32 %v381_v2, %v46_v16  ;;  %v24_v27 = vld [vmem:[%s548_s0 + $0x40] sm:$0xff]  ;;  %v26_v33 = vld [vmem:[%s548_s0 + $0x50] sm:$0xff]  ;;  %v29_v38 = vld [vmem:[%s548_s0 + $0x68] sm:$0xff] }
   0x6   :  { %v62_v18 = vadd.f32 %v381_v2, %v39_v7  ;;  %194 = vrot.lane.b32.xlu1 %v64_v13, %s344_s9  ;;  %v80_v23 = vmax.f32 %v64_v13, 0.0  ;;  %v67_v24 = vadd.f32 %v381_v2, %v44_v14  ;;  %v81_v29 = vmax.f32 %v65_v19, 0.0  ;;  %v28_v39 = vld [vmem:[%s548_s0 + $0x60] sm:$0xff]  ;;  %v31_v44 = vld [vmem:[%s548_s0 + $0x78] sm:$0xff]  ;;  %v30_v49 = vld [vmem:[%s548_s0 + $0x70] sm:$0xff] }
   0x7   :  { %v66_v25 = vadd.f32 %v381_v2, %v43_v15  ;;  %v79_v30 = vmax.f32 %v63_v20, 0.0  ;;  %v68_v31 = vadd.f32 %v381_v2, %v45_v21  ;;  %v85_v36 = vmax.f32 %v69_v26, 0.0 }
   0x8   :  { %190 = vrot.lane.b32.xlu0 %v62_v18, %s344_s9  ;;  %v78_v28 = vmax.f32 %v62_v18, 0.0  ;;  %v83_v34 = vmax.f32 %v67_v24, 0.0  ;;  %v48_v37 = vmul.f32 %v376_v1, %v25_v22  ;;  %v304_v40 = vpack.c.bf16 %v81_v29, %v80_v23 }
   0x9   :  { %v82_v35 = vmax.f32 %v66_v25, 0.0  ;;  %v84_v42 = vmax.f32 %v68_v31, 0.0  ;;  %v47_v43 = vmul.f32 %v376_v1, %v24_v27  ;;  %v50_v47 = vmul.f32 %v376_v1, %v27_v32 }
   0xa   :  { %v299_v41 = vpack.c.bf16 %v79_v30, %v78_v28  ;;  %196 = vrot.lane.b32.xlu1 %v65_v19, %s344_s9  ;;  %v71_v46 = vadd.f32 %v381_v2, %v48_v37  ;;  %v49_v48 = vmul.f32 %v376_v1, %v26_v33  ;;  %336 = vst [vmem:[%s551_s3 + $0x8] sm:$0xff] %v304_v40  }
   0xb   :  { %v309_v45 = vpack.c.bf16 %v83_v34, %v82_v35  ;;  %v314_v50 = vpack.c.bf16 %v85_v36, %v84_v42  ;;  %v70_v51 = vadd.f32 %v381_v2, %v47_v43  ;;  %v52_v52 = vmul.f32 %v376_v1, %v29_v38 }
   0xc   :  { %192 = vrot.lane.b32.xlu0 %v63_v20, %s344_s9  ;;  %300 = vst [vmem:[%s551_s3] sm:$0xff] %v299_v41   ;;  %v51_v53 = vmul.f32 %v376_v1, %v28_v39  ;;  %v87_v54 = vmax.f32 %v71_v46, 0.0  ;;  %v73_v55 = vadd.f32 %v381_v2, %v50_v47  ;;  %v72_v56 = vadd.f32 %v381_v2, %v49_v48 }
   0xd   :  { %337 = vst [vmem:[%s551_s3 + $0x10] sm:$0xff] %v309_v45   ;;  %v54_v57 = vmul.f32 %v376_v1, %v31_v44  ;;  %338 = vst [vmem:[%s551_s3 + $0x18] sm:$0xff] %v314_v50   ;;  %v86_v58 = vmax.f32 %v70_v51, 0.0  ;;  %v75_v59 = vadd.f32 %v381_v2, %v52_v52  ;;  %v53_v61 = vmul.f32 %v376_v1, %v30_v49 }
   0xe   :  { %v74_v60 = vadd.f32 %v381_v2, %v51_v53  ;;  %200 = vrot.lane.b32.xlu1 %v67_v24, %s344_s9  ;;  %v89_v62 = vmax.f32 %v73_v55, 0.0  ;;  %v88_v63 = vmax.f32 %v72_v56, 0.0 }
   0xf   :  { %v77_v0 = vadd.f32 %v381_v2, %v54_v57  ;;  %v319_v3 = vpack.c.bf16 %v87_v54, %v86_v58  ;;  %v91_v4 = vmax.f32 %v75_v59, 0.0  ;;  %v76_v6 = vadd.f32 %v381_v2, %v53_v61 }
  0x10   :  { %198 = vrot.lane.b32.xlu0 %v66_v25, %s344_s9  ;;  %v90_v5 = vmax.f32 %v74_v60, 0.0  ;;  %v324_v7 = vpack.c.bf16 %v89_v62, %v88_v63 }
  0x11   :  { %v93_v8 = vmax.f32 %v77_v0, 0.0  ;;  %339 = vst [vmem:[%s551_s3 + $0x20] sm:$0xff] %v319_v3   ;;  %v92_v9 = vmax.f32 %v76_v6, 0.0 }
  0x12   :  { %v329_v1 = vpack.c.bf16 %v91_v4, %v90_v5  ;;  %204 = vrot.lane.b32.xlu1 %v69_v26, %s344_s9  ;;  %340 = vst [vmem:[%s551_s3 + $0x28] sm:$0xff] %v324_v7  }
  0x13   :  { %v334_v2 = vpack.c.bf16 %v93_v8, %v92_v9 }
  0x14   :  { %202 = vrot.lane.b32.xlu0 %v68_v31, %s344_s9  ;;  %341 = vst [vmem:[%s551_s3 + $0x30] sm:$0xff] %v329_v1  }
  0x15   :  { %342 = vst [vmem:[%s551_s3 + $0x38] sm:$0xff] %v334_v2  }
  0x16   :  { %208 = vrot.lane.b32.xlu1 %v71_v46, %s344_s9 }
  0x18   :  { %206 = vrot.lane.b32.xlu0 %v70_v51, %s344_s9 }
  0x1a   :  { %212 = vrot.lane.b32.xlu1 %v73_v55, %s344_s9 }
  0x1c   :  { %210 = vrot.lane.b32.xlu0 %v72_v56, %s344_s9 }
  0x1e   :  { %216 = vrot.lane.b32.xlu1 %v75_v59, %s344_s9 }
  0x20   :  { %214 = vrot.lane.b32.xlu0 %v74_v60, %s344_s9 }
  0x22   :  { %220 = vrot.lane.b32.xlu1 %v77_v0, %s344_s9 }
  0x24   :  { %218 = vrot.lane.b32.xlu0 %v76_v6, %s344_s9 }
  0x78   :  { %v195_v10 = vpop.permute.xlu1 %194 }
  0x79   :  { %240 = vst [vmem:[%s552_s4 + $0x10] sm:$0xff] %v195_v10 }
  0x7a   :  { %v191_v11 = vpop.permute.xlu0 %190 }
  0x7b   :  { %238 = vst [vmem:[%s552_s4] sm:$0xff] %v191_v11 }
  0x7c   :  { %v197_v12 = vpop.permute.xlu1 %196 }
  0x7d   :  { %241 = vst [vmem:[%s552_s4 + $0x18] sm:$0xff] %v197_v12 }
  0x7e   :  { %v193_v13 = vpop.permute.xlu0 %192 }
  0x7f   :  { %239 = vst [vmem:[%s552_s4 + $0x8] sm:$0xff] %v193_v13 }
  0x80   :  { %v201_v14 = vpop.permute.xlu1 %200 }
  0x81   :  { %243 = vst [vmem:[%s552_s4 + $0x28] sm:$0xff] %v201_v14 }
  0x82   :  { %v199_v15 = vpop.permute.xlu0 %198 }
  0x83   :  { %242 = vst [vmem:[%s552_s4 + $0x20] sm:$0xff] %v199_v15 }
  0x84   :  { %v205_v16 = vpop.permute.xlu1 %204 }
  0x85   :  { %245 = vst [vmem:[%s552_s4 + $0x38] sm:$0xff] %v205_v16 }
  0x86   :  { %v203_v17 = vpop.permute.xlu0 %202 }
  0x87   :  { %244 = vst [vmem:[%s552_s4 + $0x30] sm:$0xff] %v203_v17 }
  0x88   :  { %v209_v18 = vpop.permute.xlu1 %208 }
  0x89   :  { %247 = vst [vmem:[%s552_s4 + $0x48] sm:$0xff] %v209_v18 }
  0x8a   :  { %v207_v19 = vpop.permute.xlu0 %206 }
  0x8b   :  { %246 = vst [vmem:[%s552_s4 + $0x40] sm:$0xff] %v207_v19 }
  0x8c   :  { %v213_v20 = vpop.permute.xlu1 %212 }
  0x8d   :  { %249 = vst [vmem:[%s552_s4 + $0x58] sm:$0xff] %v213_v20 }
  0x8e   :  { %v211_v21 = vpop.permute.xlu0 %210 }
  0x8f   :  { %248 = vst [vmem:[%s552_s4 + $0x50] sm:$0xff] %v211_v21 }
  0x90   :  { %v217_v22 = vpop.permute.xlu1 %216 }
  0x91   :  { %251 = vst [vmem:[%s552_s4 + $0x68] sm:$0xff] %v217_v22 }
  0x92   :  { %v215_v23 = vpop.permute.xlu0 %214 }
  0x93   :  { %250 = vst [vmem:[%s552_s4 + $0x60] sm:$0xff] %v215_v23 }
  0x94   :  { %v221_v24 = vpop.permute.xlu1 %220 }
  0x95   :  { %253 = vst [vmem:[%s552_s4 + $0x78] sm:$0xff] %v221_v24 }
  0x96   :  { %v219_v25 = vpop.permute.xlu0 %218 }
  0x97   :  { %252 = vst [vmem:[%s552_s4 + $0x70] sm:$0xff] %v219_v25 }

// kernel: _lambda_.7
= control target key start
LH: loop header
LB: loop body
LE: loop exit
PB: predicated region body
PF: predicated region fallthrough
CT: control target
= control target key end

     0   :  { %s417_s15 = smov 0   ;;  %s458_s0 = inlined_call_operand.vmem [shape: f32[128,128], index: 0, kind: input, shape index: {}]   ;;  %s459_s1 = inlined_call_operand.vmem [shape: f32[1,128], index: 1, kind: input, shape index: {}]   ;;  %s460_s2 = inlined_call_operand.vmem [shape: f32[1,128], index: 2, kind: input, shape index: {}]   ;;  %s461_s3 = inlined_call_operand.vmem [shape: f32[128,128], index: 3, kind: input, shape index: {}]   ;;  %s462_s4 = inlined_call_operand.vmem [shape: f32[128,128], index: 4, kind: output, shape index: {}]  }
   0x1 LB: > { %s361_s16 = sadd.s32 4294967295, %s390_s15   ;;  %p365_p0 = scmp.ge.s32.totalorder %s390_s15, 1  ;;  %s390_s15 = sphi %s417_s15, %s14_s15  }
   0x2   : > { %p174_p1 = scmp.lt.s32.totalorder %s390_s15, 3 }
   0x4   : > { %p175_p2 = pnand %p365_p0, %p174_p1 }
   0x5   : > { %s366_s17 = sshll.u32 (!%p175_p2), %s361_s16, 3 }
   0x6   : > { %178 = sbr.rel (%p175_p2) target bundleno = 29 (0x1d), region = 36  ;;  %p206_p3 = scmp.lt.s32.totalorder (!%p175_p2), %s366_s17, 15 }
   0xb   : > { %s464_s17 = smov (!%p206_p3, %s366_s17), 15  ;;  %v372_v0 = vld [vmem:[%s459_s1] ss:$0 sm:$0xff] }
   0xc   : > { %s425_s18 = sshll.u32 %s464_s17, 3  ;;  %v373_v2 = vld [vmem:[%s460_s2] ss:$0 sm:$0xff] }
   0xd   : > { %s209_s23 = scalar_lea.vmem %s458_s0, %s425_s18  ;;  %s438_s26 = scalar_lea.vmem %s461_s3, %s425_s18 }
   0xe   : > { %v223_v1 = vld [vmem:[%s209_s23] sm:$0xff]  ;;  %v224_v3 = vld [vmem:[%s209_s23 + $0x8] sm:$0xff]  ;;  %v225_v7 = vld [vmem:[%s209_s23 + $0x10] sm:$0xff]  ;;  %s221_s5 = scalar_lea.vmem %s462_s4, %s425_s18 }
   0xf   : > { %v238_v4 = vmul.f32 %v372_v0, %v223_v1  ;;  %v261_v5 = vld [vmem:[%s438_s26] sm:$0xff]  ;;  %v239_v6 = vmul.f32 %v372_v0, %v224_v3  ;;  %v262_v8 = vld [vmem:[%s438_s26 + $0x8] sm:$0xff]  ;;  %v240_v9 = vmul.f32 %v372_v0, %v225_v7  ;;  %v226_v10 = vld [vmem:[%s209_s23 + $0x18] sm:$0xff] }
  0x10   : > { %v227_v11 = vld [vmem:[%s209_s23 + $0x20] sm:$0xff]  ;;  %v263_v14 = vld [vmem:[%s438_s26 + $0x10] sm:$0xff]  ;;  %v241_v15 = vmul.f32 %v372_v0, %v226_v10  ;;  %v264_v16 = vld [vmem:[%s438_s26 + $0x18] sm:$0xff] }
  0x11   : > { %v253_v12 = vadd.f32 %v373_v2, %v238_v4  ;;  %v254_v13 = vadd.f32 %v373_v2, %v239_v6  ;;  %v242_v17 = vmul.f32 %v372_v0, %v227_v11  ;;  %v228_v18 = vld [vmem:[%s209_s23 + $0x28] sm:$0xff]  ;;  %v255_v19 = vadd.f32 %v373_v2, %v240_v9  ;;  %v265_v20 = vld [vmem:[%s438_s26 + $0x20] sm:$0xff]  ;;  %v229_v22 = vld [vmem:[%s209_s23 + $0x30] sm:$0xff] }
  0x12   : > { %v243_v21 = vmul.f32 %v372_v0, %v228_v18  ;;  %v230_v23 = vld [vmem:[%s209_s23 + $0x38] sm:$0xff]  ;;  %v256_v26 = vadd.f32 %v373_v2, %v241_v15  ;;  %v266_v28 = vld [vmem:[%s438_s26 + $0x28] sm:$0xff]  ;;  %v244_v31 = vmul.f32 %v372_v0, %v229_v22  ;;  %v267_v37 = vld [vmem:[%s438_s26 + $0x30] sm:$0xff] }
  0x13   : > { %v269_v24 = vadd.f32 %v261_v5, %v253_v12  ;;  %v270_v25 = vadd.f32 %v262_v8, %v254_v13  ;;  %v257_v27 = vadd.f32 %v373_v2, %v242_v17  ;;  %v271_v29 = vadd.f32 %v263_v14, %v255_v19  ;;  %v268_v38 = vld [vmem:[%s438_s26 + $0x38] sm:$0xff] }
  0x14   : > { %v258_v30 = vadd.f32 %v373_v2, %v243_v21  ;;  %v245_v32 = vmul.f32 %v372_v0, %v230_v23  ;;  %v272_v35 = vadd.f32 %v264_v16, %v256_v26  ;;  %v259_v41 = vadd.f32 %v373_v2, %v244_v31 }
  0x15   : > { %v277_v33 = vmax.f32 %v269_v24, 0.0  ;;  %v278_v34 = vmax.f32 %v270_v25, 0.0  ;;  %v273_v36 = vadd.f32 %v265_v20, %v257_v27  ;;  %v279_v39 = vmax.f32 %v271_v29, 0.0 }
  0x16   : > { %v274_v40 = vadd.f32 %v266_v28, %v258_v30  ;;  %v260_v42 = vadd.f32 %v373_v2, %v245_v32  ;;  %v280_v43 = vmax.f32 %v272_v35, 0.0  ;;  %v275_v46 = vadd.f32 %v267_v37, %v259_v41 }
  0x17   : > { %285 = vst [vmem:[%s221_s5] sm:$0xff] %v277_v33  ;;  %286 = vst [vmem:[%s221_s5 + $0x8] sm:$0xff] %v278_v34  ;;  %v281_v44 = vmax.f32 %v273_v36, 0.0 }
  0x18   : > { %287 = vst [vmem:[%s221_s5 + $0x10] sm:$0xff] %v279_v39  ;;  %v282_v45 = vmax.f32 %v274_v40, 0.0  ;;  %v276_v47 = vadd.f32 %v268_v38, %v260_v42  ;;  %288 = vst [vmem:[%s221_s5 + $0x18] sm:$0xff] %v280_v43  ;;  %v283_v48 = vmax.f32 %v275_v46, 0.0 }
  0x19   : > { %289 = vst [vmem:[%s221_s5 + $0x20] sm:$0xff] %v281_v44 }
  0x1a   : > { %290 = vst [vmem:[%s221_s5 + $0x28] sm:$0xff] %v282_v45  ;;  %v284_v49 = vmax.f32 %v276_v47, 0.0  ;;  %291 = vst [vmem:[%s221_s5 + $0x30] sm:$0xff] %v283_v48 }
  0x1c   : > { %292 = vst [vmem:[%s221_s5 + $0x38] sm:$0xff] %v284_v49 }
  0x1d PF: > { %s14_s15 = sadd.s32 1, %s390_s15  }
  0x1e   : > { %p11_p4 = scmp.ge.s32.totalorder %s14_s15, 4  }
  0x20   :  { %13 = sbr.rel (!%p11_p4) target bundleno = 1 (0x1), region = 69 }

// kernel: _lambda_.6
= control target key start
LH: loop header
LB: loop body
LE: loop exit
PB: predicated region body
PF: predicated region fallthrough
CT: control target
= control target key end

     0   :  { %s2908_s15 = smov 0   ;;  %s3460_s0 = inlined_call_operand.vmem [shape: bf16[128,128], index: 0, kind: input, shape index: {}]   ;;  %s3461_s1 = inlined_call_operand.vmem [shape: bf16[9,128,128], index: 1, kind: input, shape index: {}]   ;;  %s3462_s2 = inlined_call_operand.vmem [shape: f32[128,128], index: 2, kind: output, shape index: {0}]   ;;  %s3463_s3 = inlined_call_operand.vmem [shape: f32[16,128], index: 3, kind: output, shape index: {1}]   ;;  %s3464_s4 = inlined_call_operand.vmem [shape: f32[16,128], index: 4, kind: output, shape index: {2}]  }
   0x1 LB: > { %s2914_s16 = sadd.s32 4294967295, %s2880_s15   ;;  %p2146_p0 = scmp.ge.s32.totalorder %s2880_s15, 1  ;;  %s2880_s15 = sphi %s2908_s15, %s15_s15  }
   0x2   : > { %p168_p1 = scmp.lt.s32.totalorder %s2880_s15, 3 }
   0x4   : > { %p169_p2 = pnand %p2146_p0, %p168_p1 }
   0x6   : > { %172 = sbr.rel (%p169_p2) target bundleno = 403 (0x193), region = 28 }
   0xb   : > { %v2795_v0 = vld [vmem:[%s3461_s1 + $0x38] sm:$0xff]   ;;  %s2147_s19 = sshll.u32 %s2914_s16, 3  ;;  %v251_v2 = vlaneseq  ;;  %v2797_v3 = vld [vmem:[%s3461_s1 + $0x30] sm:$0xff]   ;;  %v2882_v5 = vmov 0.0   ;;  %v2799_v6 = vld [vmem:[%s3461_s1 + $0x28] sm:$0xff]   ;;  %p214_p4 = scmp.lt.s32.totalorder %s2914_s16, 1 }
   0xc   : > { %v2796_v1 = vld [vmem:[%s3461_s1 + $0x78] sm:$0xff]   ;;  %p2925_p3 = scmp.lt.s32.totalorder %s2147_s19, 15  ;;  %2554 = vmatprep.subr.bf16.mxu0 %v2795_v0  ;;  %v2798_v4 = vld [vmem:[%s3461_s1 + $0x70] sm:$0xff]   ;;  %223 = vst [vmem:[#allocation2] sm:$0xff] %v2882_v5  ;;  %224 = vst [vmem:[#allocation2 + $0x8] sm:$0xff] %v2882_v5 }
   0xd   : > { %2578 = vmatprep.subr.bf16.mxu1 %v2796_v1  ;;  %2555 = vmatpush3.bf16.msra.mxu0 %v2795_v0  ;;  %226 = vst [vmem:[#allocation2 + $0x58] sm:$0xff] %v2882_v5  ;;  %225 = vst [vmem:[#allocation2 + $0x50] sm:$0xff] %v2882_v5  ;;  %v2800_v7 = vld [vmem:[%s3461_s1 + $0x68] sm:$0xff]   ;;  %v2945_v8 = vshrl.u32 %v251_v2, 7  ;;  %v2801_v9 = vld [vmem:[%s3461_s1 + $0x20] sm:$0xff]   ;;  %s3502_s16 = smov (!%p214_p4, %s2914_s16), 1 }
   0xe   : > { %2579 = vmatpush3.bf16.msra.mxu1 %v2796_v1  ;;  %2556 = vmatprep.subr.bf16.mxu0 %v2797_v3  ;;  %s3500_s19 = smov (!%p2925_p3, %s2147_s19), 15  ;;  %v2802_v10 = vld [vmem:[%s3461_s1 + $0x60] sm:$0xff]   ;;  %v2803_v13 = vld [vmem:[%s3461_s1 + $0x18] sm:$0xff]   ;;  %v2805_v17 = vld [vmem:[%s3461_s1 + $0x10] sm:$0xff]  }
   0xf   : > { %2580 = vmatprep.subr.bf16.mxu1 %v2798_v4  ;;  %3467 = vst [vmem:[#allocation3_spill] sm:$0xff] %v2945_v8  ;;  %v2958_v11 = vadd.s32 8, %v2945_v8  ;;  %s2148_s9 = sshll.u32 %s3500_s19, 2  ;;  %v264_v12 = vand.u32 7, %v2945_v8  ;;  %v2804_v14 = vld [vmem:[%s3461_s1 + $0x58] sm:$0xff]   ;;  %v2806_v18 = vld [vmem:[%s3461_s1 + $0x50] sm:$0xff]  }
  0x10   : > { %s2971_s18 = scalar_lea.vmem %s3460_s0, %s2148_s9  ;;  %v2984_v20 = vadd.s32 16, %v2945_v8  ;;  %v2987_v21 = vadd.s32 24, %v2945_v8  ;;  %v2807_v28 = vld [vmem:[%s3461_s1 + $0x8] sm:$0xff]   ;;  %v3002_v33 = vadd.s32 32, %v2945_v8  ;;  %v2809_v34 = vld [vmem:[%s3461_s1] sm:$0xff]   ;;  %v3008_v35 = vadd.s32 40, %v2945_v8 }
  0x11   : > { %2557 = vmatpush3.bf16.msra.mxu0 %v2797_v3  ;;  %v271_v15 = vand.u32 7, %v2958_v11  ;;  %v364_v16 = vadd.s32 4294967295, %v264_v12  ;;  %v2428_v19 = vld [vmem:[%s2971_s18] sm:$0xff]   ;;  %v2443_v25 = vld [vmem:[%s2971_s18 + $0x8] sm:$0xff]   ;;  %v2811_v44 = vld [vmem:[%s3461_s1 + $0xb8] sm:$0xff]   ;;  %v3032_v46 = vadd.s32 48, %v2945_v8 }
  0x12   : > { %2581 = vmatpush3.bf16.msra.mxu1 %v2798_v4  ;;  %2558 = vmatprep.subr.bf16.mxu0 %v2799_v6  ;;  %v2429_v22 = vunpack.c.l.bf16 %v2428_v19  ;;  %v2430_v23 = vunpack.c.h.bf16 %v2428_v19  ;;  %v2433_v26 = vunpack.c.l.bf16 %v2443_v25  ;;  %v2434_v27 = vunpack.c.h.bf16 %v2443_v25  ;;  %v2808_v29 = vld [vmem:[%s3461_s1 + $0x48] sm:$0xff]   ;;  %v2810_v36 = vld [vmem:[%s3461_s1 + $0x40] sm:$0xff]   ;;  %v2812_v50 = vld [vmem:[%s3461_s1 + $0xf8] sm:$0xff]   ;;  %s2150_s6 = sshll.u32 %s3500_s19, 3  ;;  %s2151_s19 = sshll.u32 %s3502_s16, 3 }
  0x13   : > { %2582 = vmatprep.subr.bf16.mxu1 %v2800_v7  ;;  %v365_v24 = vadd.s32 4294967295, %v271_v15  ;;  %vm372_vm0 = vcmp.ge.s32.totalorder %v364_v16, 0  ;;  %v278_v31 = vand.u32 7, %v2984_v20  ;;  %v285_v32 = vand.u32 7, %v2987_v21  ;;  %v356_v37 = vld [vmem:[#allocation2 + $0x7] sm:$0xff]  ;;  %v2444_v51 = vld [vmem:[%s2971_s18 + $0x10] sm:$0xff]   ;;  %s3434_s9 = scalar_lea.vmem %s3462_s2, %s2150_s6  ;;  %s217_s12 = scalar_lea.vmem %s3463_s3, %s2151_s19 }
  0x14   : > { %243 = vst [vmem:[#allocation2 + $0x10] sm:$0xff] %v2429_v22  ;;  %244 = vst [vmem:[#allocation2 + $0x18] sm:$0xff] %v2430_v23  ;;  %v569_v30 = vpack.c.bf16 %v2429_v22, %v2882_v5  ;;  %v292_v41 = vand.u32 7, %v3002_v33  ;;  %v299_v45 = vand.u32 7, %v3008_v35  ;;  %v3038_v49 = vadd.s32 56, %v2945_v8  ;;  %v2445_v58 = vld [vmem:[%s2971_s18 + $0x18] sm:$0xff]   ;;  %s221_s17 = scalar_lea.vmem %s3464_s4, %s2151_s19 }
  0x15   : > { %2559 = vmatpush3.bf16.msra.mxu0 %v2799_v6  ;;  %245 = vst [vmem:[#allocation2 + $0x20] sm:$0xff] %v2433_v26  ;;  %246 = vst [vmem:[#allocation2 + $0x28] sm:$0xff] %v2434_v27  ;;  %vm373_vm1 = vcmp.ge.s32.totalorder %v365_v24, 0  ;;  %v366_v38 = vadd.s32 4294967295, %v278_v31  ;;  %v367_v39 = vadd.s32 4294967295, %v285_v32  ;;  %v2437_v55 = vunpack.c.l.bf16 %v2444_v51  ;;  %v2814_v0 = vld [vmem:[%s3461_s1 + $0xb0] sm:$0xff]  }
  0x16   : > { %2583 = vmatpush3.bf16.msra.mxu1 %v2800_v7  ;;  %2560 = vmatprep.subr.bf16.mxu0 %v2801_v9  ;;  %vm3018_vm2 = vmpackc.low %vm373_vm1, %vm372_vm0  ;;  %v368_v52 = vadd.s32 4294967295, %v292_v41  ;;  %v3053_v54 = vld [vmem:[%s2971_s18 + $0x4] ss:$4 sps:$4 sm:$0xff]   ;;  %v369_v56 = vadd.s32 4294967295, %v299_v45  ;;  %v2438_v57 = vunpack.c.h.bf16 %v2444_v51  ;;  %v2441_v60 = vunpack.c.l.bf16 %v2445_v58  ;;  %v2815_v1 = vld [vmem:[%s3461_s1 + $0xf0] sm:$0xff]  }
  0x17   : > { %2584 = vmatprep.subr.bf16.mxu1 %v2802_v10  ;;  %2594 = vmatprep.mubr.bf16.mxu1 %v569_v30  ;;  %vm374_vm3 = vcmp.ge.s32.totalorder %v366_v38, 0  ;;  %vm375_vm4 = vcmp.ge.s32.totalorder %v367_v39, 0  ;;  %v306_v61 = vand.u32 7, %v3032_v46  ;;  %v313_v62 = vand.u32 7, %v3038_v49  ;;  %247 = vst [vmem:[#allocation2 + $0x30] sm:$0xff] %v2437_v55  ;;  %v2816_v4 = vld [vmem:[%s3461_s1 + $0xa8] sm:$0xff]  }
  0x18   : > { %vm3058_vm5 = vmpackc.low %vm375_vm4, %vm374_vm3  ;;  %v2442_v63 = vunpack.c.h.bf16 %v2445_v58  ;;  %248 = vst [vmem:[#allocation2 + $0x38] sm:$0xff] %v2438_v57  ;;  %v3071_v2 = vld [vmem:[%s2971_s18 + $0xc] ss:$4 sps:$4 sm:$0xff]   ;;  %vm376_vm6 = vcmp.ge.s32.totalorder %v368_v52, 0  ;;  %vm377_vm7 = vcmp.ge.s32.totalorder %v369_v56, 0  ;;  %v735_v7 = vadd.s32 1, %v264_v12 }
  0x19   : > { %2561 = vmatpush3.bf16.msra.mxu0 %v2801_v9  ;;  %249 = vst [vmem:[#allocation2 + $0x40] sm:$0xff] %v2441_v60  ;;  %v370_v6 = vadd.s32 4294967295, %v306_v61  ;;  %v736_v9 = vadd.s32 1, %v271_v15  ;;  %vm3097_vm8 = vmpackc.low %vm377_vm7, %vm376_vm6  ;;  %v3102_v16 = vld [vmem:[%s2971_s18 + $0x14] ss:$4 sps:$4 sm:$0xff]   ;;  %v2819_v23 = vld [vmem:[%s3461_s1 + $0xe0] sm:$0xff]  }
  0x1a   : > { %2585 = vmatpush3.bf16.msra.mxu1 %v2802_v10  ;;  %2562 = vmatprep.subr.bf16.mxu0 %v2803_v13  ;;  %250 = vst [vmem:[#allocation2 + $0x48] sm:$0xff] %v2442_v63  ;;  %v3074_v3 = vpack.c.bf16 %v2882_v5, %v2442_v63  ;;  %v371_v5 = vadd.s32 4294967295, %v313_v62  ;;  %v2817_v10 = vld [vmem:[%s3461_s1 + $0xe8] sm:$0xff]   ;;  %vm751_vm11 = vcmp.lt.s32.totalorder %v735_v7, 8  ;;  %v2821_v30 = vld [vmem:[%s3461_s1 + $0xd8] sm:$0xff]   ;;  %v738_v38 = vadd.s32 1, %v285_v32 }
  0x1b   : > { %2586 = vmatprep.subr.bf16.mxu1 %v2804_v14  ;;  %v3023_v42 = vld [vmem:[#allocation2 + $0xf] sm:$0xff]  ;;  %v3025_v43 = vld [vmem:[#allocation2 + $0x17] sm:$0xff]  ;;  %vm378_vm9 = vcmp.ge.s32.totalorder %v370_v6, 0  ;;  %vm752_vm12 = vcmp.lt.s32.totalorder %v736_v9, 8  ;;  %v2828_v20 = vld [vmem:[%s3461_s1 + $0x80] sm:$0xff]   ;;  %v741_v51 = vadd.s32 1, %v306_v61 }
  0x1c   : > { %v2162_v47 = vpack.c.bf16 %v3023_v42, %v356_v37  ;;  %v3035_v48 = vld [vmem:[#allocation2 + $0x1f] sm:$0xff]  ;;  %vm379_vm10 = vcmp.ge.s32.totalorder %v371_v5, 0  ;;  %v3108_v15 = vld [vmem:[#allocation2 + $0x11] sm:$0xff]  ;;  %v2258_v27 = vpack.c.bf16 %v3025_v43, %v3023_v42  ;;  %vm3137_vm14 = vmpackc.low %vm752_vm12, %vm751_vm11  ;;  %v737_v37 = vadd.s32 1, %v278_v31 }
  0x1d   : > { %2563 = vmatpush3.bf16.msra.mxu0 %v2803_v13  ;;  %v3050_v53 = vpack.c.bf16 %v3035_v48, %v3025_v43  ;;  %v3094_v13 = vld [vmem:[#allocation2 + $0x27] sm:$0xff]  ;;  %vm3129_vm13 = vmpackc.low %vm379_vm10, %vm378_vm9  ;;  %vm754_vm0 = vcmp.lt.s32.totalorder %v738_v38, 8  ;;  %v739_v31 = vadd.s32 1, %v292_v41  ;;  %v3178_v32 = vld [vmem:[#allocation2 + $0x19] sm:$0xff]  ;;  %v740_v43 = vadd.s32 1, %v299_v45 }
  0x1e   : > { %2587 = vmatpush3.bf16.msra.mxu1 %v2804_v14  ;;  %2564 = vmatprep.subr.bf16.mxu0 %v2805_v17  ;;  %v3104_v12 = vld [vmem:[#allocation2 + $0x2f] sm:$0xff]  ;;  %vm753_vm15 = vcmp.lt.s32.totalorder %v737_v37, 8  ;;  %v2829_v21 = vld [vmem:[%s3461_s1 + $0xc0] sm:$0xff]   ;;  %v2831_v33 = vld [vmem:[%s3461_s1 + $0x178] sm:$0xff]   ;;  %v2261_v52 = vpack.c.bf16 %v3094_v13, %v3035_v48  ;;  %v742_v57 = vadd.s32 1, %v313_v62  ;;  %vm757_vm7 = vcmp.lt.s32.totalorder %v741_v51, 8 }
  0x1f   : > { %2588 = vmatprep.subr.bf16.mxu1 %v2806_v18  ;;  %2570 = vmatprep.mubr.msk.bf16.mxu0 %vm3018_vm2, %v2162_v47  ;;  %v3106_v11 = vld [vmem:[#allocation2 + $0x37] sm:$0xff]  ;;  %v3115_v19 = vpack.c.bf16 %v3104_v12, %v3094_v13  ;;  %v2825_v39 = vld [vmem:[%s3461_s1 + $0x88] sm:$0xff]   ;;  %vm3184_vm1 = vmpackc.low %vm754_vm0, %vm753_vm15  ;;  %vm755_vm3 = vcmp.lt.s32.totalorder %v739_v31, 8  ;;  %vm756_vm4 = vcmp.lt.s32.totalorder %v740_v43, 8  ;;  %v2318_v9 = vpack.c.bf16 %v3178_v32, %v3108_v15 }
  0x20   : > { %v3117_v22 = vld [vmem:[#allocation2 + $0x3f] sm:$0xff]  ;;  %v2826_v42 = vld [vmem:[%s3461_s1 + $0xc8] sm:$0xff]   ;;  %v3200_v45 = vld [vmem:[#allocation2 + $0x31] sm:$0xff]  ;;  %v2264_v49 = vpack.c.bf16 %v3106_v11, %v3104_v12  ;;  %vm758_vm9 = vcmp.lt.s32.totalorder %v742_v57, 8 }
  0x21   : > { %2565 = vmatpush3.bf16.msra.mxu0 %v2805_v17  ;;  %v727_v17 = vld [vmem:[#allocation2 + $0x9] sm:$0xff]  ;;  %v3124_v24 = vpack.c.bf16 %v3117_v22, %v3106_v11  ;;  %vm3214_vm6 = vmpackc.low %vm756_vm4, %vm755_vm3  ;;  %v3222_v58 = vld [vmem:[#allocation2 + $0x39] sm:$0xff] }
  0x22   : > { %2589 = vmatpush3.bf16.msra.mxu1 %v2806_v18  ;;  %2566 = vmatprep.subr.bf16.mxu0 %v2807_v28  ;;  %v2818_v18 = vld [vmem:[%s3461_s1 + $0xa0] sm:$0xff]   ;;  %v2222_v26 = vpack.c.bf16 %v3108_v15, %v727_v17  ;;  %v3194_v35 = vld [vmem:[#allocation2 + $0x29] sm:$0xff]  ;;  %vm3244_vm10 = vmpackc.low %vm758_vm9, %vm757_vm7  ;;  %v2324_v37 = vpack.c.bf16 %v3222_v58, %v3200_v45 }
  0x23   : > { %2590 = vmatprep.subr.bf16.mxu1 %v2808_v29  ;;  %v2832_v55 = vld [vmem:[%s3461_s1 + $0x130] sm:$0xff]   ;;  %v3220_v48 = vpack.c.bf16 %v3200_v45, %v3194_v35  ;;  %v3227_v60 = vld [vmem:[#allocation2 + $0x41] sm:$0xff]  ;;  %v2839_v13 = vld [vmem:[%s3461_s1 + $0x158] sm:$0xff]  }
  0x24   : > { %v2833_v56 = vld [vmem:[%s3461_s1 + $0x170] sm:$0xff]   ;;  %v2834_v61 = vld [vmem:[%s3461_s1 + $0x128] sm:$0xff]   ;;  %v2837_v5 = vld [vmem:[%s3461_s1 + $0x160] sm:$0xff]  }
  0x25   : > { %2567 = vmatpush3.bf16.msra.mxu0 %v2807_v28  ;;  %v3236_v62 = vld [vmem:[#allocation2 + $0x47] sm:$0xff]  ;;  %v2840_v17 = vld [vmem:[%s3461_s1 + $0x110] sm:$0xff]   ;;  %v2858_v43 = vld [vmem:[%s3461_s1 + $0x198] sm:$0xff]  }
  0x26   : > { %2591 = vmatpush3.bf16.msra.mxu1 %v2808_v29  ;;  %2568 = vmatprep.subr.bf16.mxu0 %v2809_v34  ;;  %v2820_v29 = vld [vmem:[%s3461_s1 + $0x98] sm:$0xff]   ;;  %v2835_v63 = vld [vmem:[%s3461_s1 + $0x168] sm:$0xff]   ;;  %v2267_v6 = vpack.c.bf16 %v3236_v62, %v3117_v22  ;;  %v2846_v7 = vld [vmem:[%s2971_s18] sm:$0xff] }
  0x27   : > { %2592 = vmatprep.subr.bf16.mxu1 %v2810_v36  ;;  %v2841_v12 = vld [vmem:[%s3461_s1 + $0x150] sm:$0xff]   ;;  %v2842_v11 = vld [vmem:[%s3461_s1 + $0x108] sm:$0xff]   ;;  %v2845_v22 = vld [vmem:[%s3461_s1 + $0x140] sm:$0xff]  }
  0x28   : > { %v2843_v15 = vld [vmem:[%s3461_s1 + $0x148] sm:$0xff]   ;;  %v2856_v31 = vld [vmem:[%s3461_s1 + $0x1a0] sm:$0xff]   ;;  %v2866_v45 = vld [vmem:[%s3461_s1 + $0x238] sm:$0xff]  }
  0x29   : > { %2569 = vmatpush3.bf16.msra.mxu0 %v2809_v34  ;;  %v2822_v34 = vld [vmem:[%s3461_s1 + $0x90] sm:$0xff]   ;;  %v2854_v38 = vld [vmem:[%s3461_s1 + $0x1a8] sm:$0xff]   ;;  %v2869_v59 = vld [vmem:[%s3461_s1 + $0x220] sm:$0xff]  }
  0x2a   : > { %2593 = vmatpush3.bf16.msra.mxu1 %v2810_v36  ;;  %2602 = vmatprep.subr.bf16.mxu0 %v2811_v44  ;;  %v2823_v36 = vld [vmem:[%s3461_s1 + $0xd0] sm:$0xff]   ;;  %v2862_v40 = vld [vmem:[%s3461_s1 + $0x188] sm:$0xff]  }
  0x2b   : > { %2626 = vmatprep.subr.bf16.mxu1 %v2812_v50  ;;  %v2867_v51 = vld [vmem:[%s3461_s1 + $0x230] sm:$0xff]   ;;  %v2872_v14 = vld [vmem:[%s3461_s1 + $0x208] sm:$0xff]  }
  0x2c   : > { %2571 = vmatmul.mubr.msk.bf16.vlgmr.msra.gmra.mxu0 %vm3058_vm5, %v3050_v53 }
  0x2d   : > { %2595 = vmatmul.mubr.bf16.vlgmr.msra.gmra.mxu1 %v3053_v54  ;;  %2603 = vmatpush3.bf16.msra.mxu0 %v2811_v44  ;;  %v3182_v44 = vld [vmem:[#allocation2 + $0x21] sm:$0xff] }
  0x2e   : > { %2627 = vmatpush3.bf16.msra.mxu1 %v2812_v50  ;;  %2604 = vmatprep.subr.bf16.mxu0 %v2814_v0  ;;  %v2830_v50 = vld [vmem:[%s3461_s1 + $0x138] sm:$0xff]   ;;  %v3198_v41 = vpack.c.bf16 %v3182_v44, %v3178_v32  ;;  %v2857_v32 = vld [vmem:[%s3461_s1 + $0x1e0] sm:$0xff]  }
  0x2f   : > { %2628 = vmatprep.subr.bf16.mxu1 %v2815_v1  ;;  %2598 = vmatprep.mubr.bf16.mxu1 %v3071_v2 }
  0x30   : > { %2574 = vmatprep.mubr.msk.bf16.mxu0 %vm3097_vm8, %v3115_v19 }
  0x31   : > { %2605 = vmatpush3.bf16.msra.mxu0 %v2814_v0 }
  0x32   : > { %2629 = vmatpush3.bf16.msra.mxu1 %v2815_v1  ;;  %2606 = vmatprep.subr.bf16.mxu0 %v2816_v4  ;;  %v3250_v1 = vpack.c.bf16 %v3227_v60, %v3222_v58 }
  0x33   : > { %2630 = vmatprep.subr.bf16.mxu1 %v2817_v10 }
  0x34   : > { %2575 = vmatmul.mubr.msk.bf16.gmra.mxu0 %vm3129_vm13, %v3124_v24 }
  0x35   : > { %2607 = vmatpush3.bf16.msra.mxu0 %v2816_v4  ;;  %2599 = vmatmul.mubr.bf16.gmra.mxu1 %v3102_v16  ;;  %v2836_v4 = vld [vmem:[%s3461_s1 + $0x120] sm:$0xff]  }
  0x36   : > { %2631 = vmatpush3.bf16.msra.mxu1 %v2817_v10  ;;  %2608 = vmatprep.subr.bf16.mxu0 %v2818_v18  ;;  %v2838_v10 = vld [vmem:[%s3461_s1 + $0x118] sm:$0xff]  }
  0x37   : > { %2632 = vmatprep.subr.bf16.mxu1 %v2819_v23  ;;  %2618 = vmatprep.mubr.msk.bf16.mxu0 %vm3137_vm14, %v2222_v26  ;;  %v2849_v26 = vld [vmem:[%s3461_s1 + $0x1f8] sm:$0xff]  }
  0x38   : > { %2642 = vmatprep.mubr.msk.bf16.mxu1 %vm3018_vm2, %v2258_v27  ;;  %v2847_v27 = vld [vmem:[%s2971_s18 + $0x8] sm:$0xff] }
  0x39   : > { %2609 = vmatpush3.bf16.msra.mxu0 %v2818_v18  ;;  %v2844_v18 = vld [vmem:[%s3461_s1 + $0x100] sm:$0xff]  }
  0x3a   : > { %2633 = vmatpush3.bf16.msra.mxu1 %v2819_v23  ;;  %2610 = vmatprep.subr.bf16.mxu0 %v2820_v29  ;;  %v2848_v23 = vld [vmem:[%s3461_s1 + $0x1b8] sm:$0xff]  }
  0x3b   : > { %2634 = vmatprep.subr.bf16.mxu1 %v2821_v30 }
  0x3d   : > { %2611 = vmatpush3.bf16.msra.mxu0 %v2820_v29  ;;  %v2321_v29 = vpack.c.bf16 %v3194_v35, %v3182_v44  ;;  %v2859_v44 = vld [vmem:[%s3461_s1 + $0x1d8] sm:$0xff]   ;;  %v2865_v35 = vld [vmem:[%s3461_s1 + $0x1c0] sm:$0xff]  }
  0x3e   : > { %2635 = vmatpush3.bf16.msra.mxu1 %v2821_v30  ;;  %2612 = vmatprep.subr.bf16.mxu0 %v2822_v34  ;;  %v2850_v30 = vld [vmem:[%s3461_s1 + $0x1b0] sm:$0xff]  }
  0x3f   : > { %2636 = vmatprep.subr.bf16.mxu1 %v2823_v36 }
  0x41   : > { %2613 = vmatpush3.bf16.msra.mxu0 %v2822_v34  ;;  %v2851_v34 = vld [vmem:[%s3461_s1 + $0x1f0] sm:$0xff]  }
  0x42   : > { %2637 = vmatpush3.bf16.msra.mxu1 %v2823_v36  ;;  %2614 = vmatprep.subr.bf16.mxu0 %v2825_v39  ;;  %v2852_v36 = vld [vmem:[%s2971_s18 + $0x10] sm:$0xff] }
  0x43   : > { %2638 = vmatprep.subr.bf16.mxu1 %v2826_v42 }
  0x45   : > { %2615 = vmatpush3.bf16.msra.mxu0 %v2825_v39  ;;  %v3319_v39 = vld [vmem:[#allocation2 + $0x49] sm:$0xff] }
  0x46   : > { %2639 = vmatpush3.bf16.msra.mxu1 %v2826_v42  ;;  %2616 = vmatprep.subr.bf16.mxu0 %v2828_v20  ;;  %v2855_v42 = vld [vmem:[%s3461_s1 + $0x1e8] sm:$0xff]  }
  0x47   : > { %2640 = vmatprep.subr.bf16.mxu1 %v2829_v21 }
  0x49   : > { %2617 = vmatpush3.bf16.msra.mxu0 %v2828_v20  ;;  %v2853_v20 = vld [vmem:[%s2971_s18 + $0x18] sm:$0xff] }
  0x4a   : > { %2641 = vmatpush3.bf16.msra.mxu1 %v2829_v21  ;;  %2650 = vmatprep.subr.bf16.mxu0 %v2830_v50  ;;  %v2327_v21 = vpack.c.bf16 %v3319_v39, %v3227_v60 }
  0x4b   : > { %2674 = vmatprep.subr.bf16.mxu1 %v2831_v33 }
  0x4c   : > { %2619 = vmatmul.mubr.msk.bf16.vlgmr.msra.gmra.mxu0 %vm3184_vm1, %v3198_v41 }
  0x4d   : > { %2643 = vmatmul.mubr.msk.bf16.vlgmr.msra.gmra.mxu1 %vm3058_vm5, %v2261_v52  ;;  %2651 = vmatpush3.bf16.msra.mxu0 %v2830_v50  ;;  %v2860_v50 = vld [vmem:[%s3461_s1 + $0x190] sm:$0xff]  }
  0x4e   : > { %2675 = vmatpush3.bf16.msra.mxu1 %v2831_v33  ;;  %2652 = vmatprep.subr.bf16.mxu0 %v2832_v55  ;;  %v2861_v33 = vld [vmem:[%s3461_s1 + $0x1d0] sm:$0xff]  }
  0x4f   : > { %2676 = vmatprep.subr.bf16.mxu1 %v2833_v56  ;;  %2622 = vmatprep.mubr.msk.bf16.mxu0 %vm3214_vm6, %v3220_v48  ;;  %v1470_v52 = vld [vmem:[#allocation2 + $0x4f] sm:$0xff] }
  0x50   : > { %2646 = vmatprep.mubr.msk.bf16.mxu1 %vm3097_vm8, %v2264_v49 }
  0x51   : > { %2653 = vmatpush3.bf16.msra.mxu0 %v2832_v55  ;;  %v2868_v55 = vld [vmem:[%s3461_s1 + $0x228] sm:$0xff]  }
  0x52   : > { %2677 = vmatpush3.bf16.msra.mxu1 %v2833_v56  ;;  %2654 = vmatprep.subr.bf16.mxu0 %v2834_v61  ;;  %v2363_v56 = vpack.c.bf16 %v1470_v52, %v3236_v62 }
  0x53   : > { %2678 = vmatprep.subr.bf16.mxu1 %v2835_v63 }
  0x54   : > { %2623 = vmatmul.mubr.msk.bf16.gmra.mxu0 %vm3244_vm10, %v3250_v1 }
  0x55   : > { %2655 = vmatpush3.bf16.msra.mxu0 %v2834_v61  ;;  %2647 = vmatmul.mubr.msk.bf16.gmra.mxu1 %vm3129_vm13, %v2267_v6 }
  0x56   : > { %2679 = vmatpush3.bf16.msra.mxu1 %v2835_v63  ;;  %2656 = vmatprep.subr.bf16.mxu0 %v2836_v4 }
  0x57   : > { %2680 = vmatprep.subr.bf16.mxu1 %v2837_v5  ;;  %2666 = vmatprep.mubr.bf16.mxu0 %v2846_v7 }
  0x58   : > { %2690 = vmatprep.mubr.msk.bf16.mxu1 %vm3137_vm14, %v2318_v9 }
  0x59   : > { %2657 = vmatpush3.bf16.msra.mxu0 %v2836_v4 }
  0x5a   : > { %2681 = vmatpush3.bf16.msra.mxu1 %v2837_v5  ;;  %2658 = vmatprep.subr.bf16.mxu0 %v2838_v10 }
  0x5b   : > { %2682 = vmatprep.subr.bf16.mxu1 %v2839_v13 }
  0x5d   : > { %2659 = vmatpush3.bf16.msra.mxu0 %v2838_v10 }
  0x5e   : > { %2683 = vmatpush3.bf16.msra.mxu1 %v2839_v13  ;;  %2660 = vmatprep.subr.bf16.mxu0 %v2840_v17 }
  0x5f   : > { %2684 = vmatprep.subr.bf16.mxu1 %v2841_v12 }
  0x61   : > { %2661 = vmatpush3.bf16.msra.mxu0 %v2840_v17 }
  0x62   : > { %2685 = vmatpush3.bf16.msra.mxu1 %v2841_v12  ;;  %2662 = vmatprep.subr.bf16.mxu0 %v2842_v11 }
  0x63   : > { %2686 = vmatprep.subr.bf16.mxu1 %v2843_v15 }
  0x65   : > { %2663 = vmatpush3.bf16.msra.mxu0 %v2842_v11 }
  0x66   : > { %2687 = vmatpush3.bf16.msra.mxu1 %v2843_v15  ;;  %2664 = vmatprep.subr.bf16.mxu0 %v2844_v18 }
  0x67   : > { %2688 = vmatprep.subr.bf16.mxu1 %v2845_v22 }
  0x69   : > { %2665 = vmatpush3.bf16.msra.mxu0 %v2844_v18 }
  0x6a   : > { %2689 = vmatpush3.bf16.msra.mxu1 %v2845_v22  ;;  %2698 = vmatprep.subr.bf16.mxu0 %v2848_v23 }
  0x6b   : > { %2722 = vmatprep.subr.bf16.mxu1 %v2849_v26 }
  0x6c   : > { %2667 = vmatmul.mubr.bf16.vlgmr.msra.gmra.mxu0 %v2847_v27 }
  0x6d   : > { %2691 = vmatmul.mubr.msk.bf16.vlgmr.msra.gmra.mxu1 %vm3184_vm1, %v2321_v29  ;;  %2699 = vmatpush3.bf16.msra.mxu0 %v2848_v23 }
  0x6e   : > { %2723 = vmatpush3.bf16.msra.mxu1 %v2849_v26  ;;  %2700 = vmatprep.subr.bf16.mxu0 %v2850_v30 }
  0x6f   : > { %2724 = vmatprep.subr.bf16.mxu1 %v2851_v34  ;;  %2670 = vmatprep.mubr.bf16.mxu0 %v2852_v36 }
  0x70   : > { %2694 = vmatprep.mubr.msk.bf16.mxu1 %vm3214_vm6, %v2324_v37 }
  0x71   : > { %2701 = vmatpush3.bf16.msra.mxu0 %v2850_v30 }
  0x72   : > { %2725 = vmatpush3.bf16.msra.mxu1 %v2851_v34  ;;  %2702 = vmatprep.subr.bf16.mxu0 %v2854_v38 }
  0x73   : > { %2726 = vmatprep.subr.bf16.mxu1 %v2855_v42 }
  0x74   : > { %2671 = vmatmul.mubr.bf16.gmra.mxu0 %v2853_v20 }
  0x75   : > { %2703 = vmatpush3.bf16.msra.mxu0 %v2854_v38  ;;  %2695 = vmatmul.mubr.msk.bf16.gmra.mxu1 %vm3244_vm10, %v2327_v21 }
  0x76   : > { %2727 = vmatpush3.bf16.msra.mxu1 %v2855_v42  ;;  %2704 = vmatprep.subr.bf16.mxu0 %v2856_v31 }
  0x77   : > { %2728 = vmatprep.subr.bf16.mxu1 %v2857_v32  ;;  %2714 = vmatprep.mubr.msk.bf16.mxu0 %vm3018_vm2, %v3050_v53  ;;  %v2863_v53 = vld [vmem:[%s3461_s1 + $0x1c8] sm:$0xff]  }
  0x78   : > { %2738 = vmatprep.mubr.bf16.mxu1 %v3053_v54  ;;  %v2864_v54 = vld [vmem:[%s3461_s1 + $0x180] sm:$0xff]  }
  0x79   : > { %2705 = vmatpush3.bf16.msra.mxu0 %v2856_v31 }
  0x7a   : > { %2729 = vmatpush3.bf16.msra.mxu1 %v2857_v32  ;;  %2706 = vmatprep.subr.bf16.mxu0 %v2858_v43 }
  0x7b   : > { %2730 = vmatprep.subr.bf16.mxu1 %v2859_v44 }
  0x7d   : > { %2707 = vmatpush3.bf16.msra.mxu0 %v2858_v43 }
  0x7e   : > { %2731 = vmatpush3.bf16.msra.mxu1 %v2859_v44  ;;  %2708 = vmatprep.subr.bf16.mxu0 %v2860_v50 }
  0x7f   : > { %2732 = vmatprep.subr.bf16.mxu1 %v2861_v33 }
  0x81   : > { %2709 = vmatpush3.bf16.msra.mxu0 %v2860_v50 }
  0x82   : > { %2733 = vmatpush3.bf16.msra.mxu1 %v2861_v33  ;;  %2710 = vmatprep.subr.bf16.mxu0 %v2862_v40 }
  0x83   : > { %2734 = vmatprep.subr.bf16.mxu1 %v2863_v53 }
  0x85   : > { %2711 = vmatpush3.bf16.msra.mxu0 %v2862_v40 }
  0x86   : > { %2735 = vmatpush3.bf16.msra.mxu1 %v2863_v53  ;;  %2712 = vmatprep.subr.bf16.mxu0 %v2864_v54 }
  0x87   : > { %2736 = vmatprep.subr.bf16.mxu1 %v2865_v35 }
  0x89   : > { %2713 = vmatpush3.bf16.msra.mxu0 %v2864_v54 }
  0x8a   : > { %2737 = vmatpush3.bf16.msra.mxu1 %v2865_v35  ;;  %2746 = vmatprep.subr.bf16.mxu0 %v2866_v45 }
  0x8b   : > { %2770 = vmatprep.subr.bf16.mxu1 %v2866_v45 }
  0x8c   : > { %2715 = vmatmul.mubr.msk.bf16.vlgmr.msra.gmra.mxu0 %vm3058_vm5, %v3115_v19  ;;  %v1810_v19 = vld [vmem:[#allocation2 + $0x51] sm:$0xff] }
  0x8d   : > { %2739 = vmatmul.mubr.bf16.vlgmr.msra.gmra.mxu1 %v3071_v2  ;;  %2747 = vmatpush3.bf16.msra.mxu0 %v2866_v45  ;;  %v2870_v2 = vld [vmem:[%s3461_s1 + $0x218] sm:$0xff]  }
  0x8e   : > { %2778 = vmatpush3.bf16.msra.mxu1 %v2866_v45  ;;  %2748 = vmatprep.subr.bf16.mxu0 %v2867_v51 }
  0x8f   : > { %2771 = vmatprep.subr.bf16.mxu1 %v2867_v51  ;;  %2718 = vmatprep.mubr.msk.bf16.mxu0 %vm3097_vm8, %v3124_v24  ;;  %v2423_v24 = vpack.c.bf16 %v1810_v19, %v3319_v39 }
  0x90   : > { %2742 = vmatprep.mubr.bf16.mxu1 %v3102_v16  ;;  %v2873_v16 = vld [vmem:[%s3461_s1 + $0x200] sm:$0xff]  }
  0x91   : > { %2749 = vmatpush3.bf16.msra.mxu0 %v2867_v51 }
  0x92   : > { %2779 = vmatpush3.bf16.msra.mxu1 %v2867_v51  ;;  %2750 = vmatprep.subr.bf16.mxu0 %v2868_v55 }
  0x93   : > { %2772 = vmatprep.subr.bf16.mxu1 %v2868_v55 }
  0x94   : > { %2719 = vmatmul.mubr.msk.bf16.gmra.mxu0 %vm3129_vm13, %v2363_v56 }
  0x95   : > { %2751 = vmatpush3.bf16.msra.mxu0 %v2868_v55  ;;  %2743 = vmatmul.mubr.bf16.gmra.mxu1 %v3074_v3  ;;  %v2871_v3 = vld [vmem:[%s3461_s1 + $0x210] sm:$0xff]  }
  0x96   : > { %2780 = vmatpush3.bf16.msra.mxu1 %v2868_v55  ;;  %2752 = vmatprep.subr.bf16.mxu0 %v2869_v59 }
  0x97   : > { %2773 = vmatprep.subr.bf16.mxu1 %v2869_v59  ;;  %2762 = vmatprep.mubr.msk.bf16.mxu0 %vm3137_vm14, %v3198_v41 }
  0x98   : > { %2766 = vmatprep.mubr.msk.bf16.mxu1 %vm3214_vm6, %v3250_v1 }
  0x99   : > { %2753 = vmatpush3.bf16.msra.mxu0 %v2869_v59 }
  0x9a   : > { %2781 = vmatpush3.bf16.msra.mxu1 %v2869_v59  ;;  %2754 = vmatprep.subr.bf16.mxu0 %v2870_v2 }
  0x9b   : > { %2774 = vmatprep.subr.bf16.mxu1 %v2870_v2 }
  0x9d   : > { %2755 = vmatpush3.bf16.msra.mxu0 %v2870_v2 }
  0x9e   : > { %2782 = vmatpush3.bf16.msra.mxu1 %v2870_v2  ;;  %2756 = vmatprep.subr.bf16.mxu0 %v2871_v3 }
  0x9f   : > { %2775 = vmatprep.subr.bf16.mxu1 %v2871_v3 }
  0xa1   : > { %2757 = vmatpush3.bf16.msra.mxu0 %v2871_v3 }
  0xa2   : > { %2783 = vmatpush3.bf16.msra.mxu1 %v2871_v3  ;;  %2758 = vmatprep.subr.bf16.mxu0 %v2872_v14 }
  0xa3   : > { %2776 = vmatprep.subr.bf16.mxu1 %v2872_v14 }
  0xa5   : > { %2759 = vmatpush3.bf16.msra.mxu0 %v2872_v14 }
  0xa6   : > { %2784 = vmatpush3.bf16.msra.mxu1 %v2872_v14  ;;  %2760 = vmatprep.subr.bf16.mxu0 %v2873_v16 }
  0xa7   : > { %2777 = vmatprep.subr.bf16.mxu1 %v2873_v16 }
  0xa9   : > { %2761 = vmatpush3.bf16.msra.mxu0 %v2873_v16 }
  0xaa   : > { %2785 = vmatpush3.bf16.msra.mxu1 %v2873_v16 }
  0xac   : > { %2763 = vmatmul.mubr.msk.bf16.vlgmr.msra.gmra.mxu0 %vm3184_vm1, %v3220_v48 }
  0xad   : > { %2767 = vmatmul.mubr.msk.bf16.vlgmr.msra.gmra.mxu1 %vm3244_vm10, %v2423_v24 }
  0xec   : > { %v2572_v25 = vpop.f32.mrf.mxu0 }
  0xed   : > { %v2596_v28 = vpop.f32.mrf.mxu1 }
  0xee   : > { %v522_v41 = vpop.f32.mrf.mxu0  ;;  %v713_v55 = vadd.f32 %v2596_v28, %v2572_v25 }
  0xef   : > { %v672_v57 = vpop.f32.mrf.mxu1 }
  0xf0   : > { %v2573_v46 = vpop.f32.mrf.mxu0  ;;  %v711_v2 = vadd.f32 %v672_v57, %v522_v41 }
  0xf1   : > { %v2597_v58 = vpop.f32.mrf.mxu1 }
  0xf2   : > { %v525_v60 = vpop.f32.mrf.mxu0  ;;  %v714_v24 = vadd.f32 %v2597_v58, %v2573_v46 }
  0xf3   : > { %v675_v49 = vpop.f32.mrf.mxu1 }
  0xf4   : > { %v2576_v61 = vpop.f32.mrf.mxu0 }
  0xf5   : > { %v2600_v62 = vpop.f32.mrf.mxu1 }
  0xf6   : > { %v538_v63 = vpop.f32.mrf.mxu0  ;;  %v717_v56 = vadd.f32 %v2600_v62, %v2576_v61 }
  0xf7   : > { %v688_v1 = vpop.f32.mrf.mxu1 }
  0xf8   : > { %v2577_v4 = vpop.f32.mrf.mxu0  ;;  %v715_v16 = vadd.f32 %v688_v1, %v538_v63 }
  0xf9   : > { %v2601_v6 = vpop.f32.mrf.mxu1 }
  0xfa   : > { %v541_v5 = vpop.f32.mrf.mxu0 }
  0xfb   : > { %v691_v47 = vpop.f32.mrf.mxu1 }
  0xfc   : > { %v716_v28 = vadd.f32 %v691_v47, %v541_v5 }
 0x10c   : > { %v2620_v48 = vpop.f32.mrf.mxu0 }
 0x10d   : > { %v2644_v7 = vpop.f32.mrf.mxu1  ;;  %v935_v3 = vadd.f32 %v2620_v48, %v713_v55 }
 0x10e   : > { %v894_v0 = vpop.f32.mrf.mxu0 }
 0x10f   : > { %v1068_v9 = vpop.f32.mrf.mxu1  ;;  %v933_v8 = vadd.f32 %v894_v0, %v711_v2 }
 0x110   : > { %v2621_v10 = vpop.f32.mrf.mxu0 }
 0x111   : > { %v2645_v13 = vpop.f32.mrf.mxu1  ;;  %v1107_v41 = vadd.f32 %v1068_v9, %v933_v8 }
 0x112   : > { %v897_v17 = vpop.f32.mrf.mxu0 }
 0x113   : > { %v3413_v12 = vpop.f32.mrf.mxu1 }
 0x114   : > { %3484 = vst [vmem:[#allocation4_spill] sm:$0xff] %v3413_v12  ;;  %v2624_v11 = vpop.f32.mrf.mxu0  ;;  %v712_v12 = vadd.f32 %v675_v49, %v525_v60 }
 0x115   : > { %v2648_v15 = vpop.f32.mrf.mxu1  ;;  %v939_v19 = vadd.f32 %v2624_v11, %v717_v56 }
 0x116   : > { %v910_v18 = vpop.f32.mrf.mxu0  ;;  %v934_v57 = vadd.f32 %v897_v17, %v712_v12 }
 0x117   : > { %v1084_v22 = vpop.f32.mrf.mxu1  ;;  %v1113_v62 = vadd.f32 %v2648_v15, %v939_v19 }
 0x118   : > { %v2625_v23 = vpop.f32.mrf.mxu0 }
 0x119   : > { %v2649_v26 = vpop.f32.mrf.mxu1 }
 0x11a   : > { %v913_v27 = vpop.f32.mrf.mxu0 }
 0x11b   : > { %v1087_v29 = vpop.f32.mrf.mxu1  ;;  %v938_v55 = vadd.f32 %v913_v27, %v716_v28  ;;  %v3491_v60 = vld [vmem:[#allocation4_spill] sm:$0xff] }
 0x11c   : > { %v1108_v49 = vadd.f32 %v3491_v60, %v934_v57 }
 0x11d   : > { %v1112_v5 = vadd.f32 %v1087_v29, %v938_v55 }
 0x12c   : > { %v2668_v30 = vpop.f32.mrf.mxu0 }
 0x12d   : > { %v2692_v34 = vpop.f32.mrf.mxu1 }
 0x12e   : > { %v1234_v36 = vpop.f32.mrf.mxu0 }
 0x12f   : > { %v1408_v37 = vpop.f32.mrf.mxu1  ;;  %v1273_v46 = vadd.f32 %v1234_v36, %v1107_v41 }
 0x130   : > { %v2669_v38 = vpop.f32.mrf.mxu0 }
 0x131   : > { %v3415_v39 = vpop.f32.mrf.mxu1  ;;  %v1447_v9 = vadd.f32 %v1408_v37, %v1273_v46 }
 0x132   : > { %3485 = vst [vmem:[#allocation5_spill] sm:$0xff] %v3415_v39  ;;  %v1237_v42 = vpop.f32.mrf.mxu0 }
 0x133   : > { %v3417_v20 = vpop.f32.mrf.mxu1  ;;  %v1274_v17 = vadd.f32 %v1237_v42, %v1108_v49 }
 0x134   : > { %3486 = vst [vmem:[#allocation6_spill] sm:$0xff] %v3417_v20  ;;  %v2672_v21 = vpop.f32.mrf.mxu0  ;;  %v937_v20 = vadd.f32 %v910_v18, %v715_v16 }
 0x135   : > { %v2696_v31 = vpop.f32.mrf.mxu1  ;;  %v1279_v1 = vadd.f32 %v2672_v21, %v1113_v62 }
 0x136   : > { %v1250_v32 = vpop.f32.mrf.mxu0 }
 0x137   : > { %v1424_v43 = vpop.f32.mrf.mxu1 }
 0x138   : > { %v2673_v44 = vpop.f32.mrf.mxu0 }
 0x139   : > { %v2697_v50 = vpop.f32.mrf.mxu1 }
 0x13a   : > { %v1253_v33 = vpop.f32.mrf.mxu0 }
 0x13b   : > { %v3419_v40 = vpop.f32.mrf.mxu1  ;;  %v1278_v18 = vadd.f32 %v1253_v33, %v1112_v5 }
 0x13c   : > { %3487 = vst [vmem:[#allocation7_spill] sm:$0xff] %v3419_v40  ;;  %v718_v40 = vadd.f32 %v2601_v6, %v2577_v4 }
 0x13e   : > { %v940_v61 = vadd.f32 %v2625_v23, %v718_v40  ;;  %v3492_v23 = vld [vmem:[#allocation5_spill] sm:$0xff] }
 0x140   : > { %v1114_v4 = vadd.f32 %v2649_v26, %v940_v61 }
 0x142   : > { %v1280_v47 = vadd.f32 %v2673_v44, %v1114_v4 }
 0x143   : > { %v3494_v37 = vld [vmem:[#allocation7_spill] sm:$0xff] }
 0x14c   : > { %v2716_v53 = vpop.f32.mrf.mxu0 }
 0x14d   : > { %v2740_v54 = vpop.f32.mrf.mxu1 }
 0x14e   : > { %v1582_v35 = vpop.f32.mrf.mxu0 }
 0x14f   : > { %v3421_v45 = vpop.f32.mrf.mxu1  ;;  %v1621_v27 = vadd.f32 %v1582_v35, %v1447_v9 }
 0x150   : > { %3488 = vst [vmem:[#allocation8_spill] sm:$0xff] %v3421_v45  ;;  %v2717_v51 = vpop.f32.mrf.mxu0  ;;  %v1109_v45 = vadd.f32 %v2644_v7, %v935_v3 }
 0x151   : > { %v3423_v52 = vpop.f32.mrf.mxu1 }
 0x152   : > { %3489 = vst [vmem:[#allocation9_spill] sm:$0xff] %v3423_v52  ;;  %v1585_v59 = vpop.f32.mrf.mxu0  ;;  %v936_v52 = vadd.f32 %v2621_v10, %v714_v24  ;;  %v1275_v48 = vadd.f32 %v2668_v30, %v1109_v45  ;;  %v1453_v10 = vadd.f32 %v2696_v31, %v1279_v1  ;;  %v1454_v30 = vadd.f32 %v2697_v50, %v1280_v47 }
 0x153   : > { %v3425_v14 = vpop.f32.mrf.mxu1 }
 0x154   : > { %3490 = vst [vmem:[#allocation10_spill] sm:$0xff] %v3425_v14  ;;  %v2720_v39 = vpop.f32.mrf.mxu0  ;;  %v1111_v14 = vadd.f32 %v1084_v22, %v937_v20  ;;  %v1110_v11 = vadd.f32 %v2645_v13, %v936_v52  ;;  %v1449_v7 = vadd.f32 %v2692_v34, %v1275_v48  ;;  %v3493_v34 = vld [vmem:[#allocation6_spill] sm:$0xff] }
 0x155   : > { %v2744_v25 = vpop.f32.mrf.mxu1  ;;  %v1627_v13 = vadd.f32 %v2720_v39, %v1453_v10  ;;  %v1452_v39 = vadd.f32 %v3494_v37, %v1278_v18 }
 0x156   : > { %v1598_v63 = vpop.f32.mrf.mxu0  ;;  %v1277_v6 = vadd.f32 %v1250_v32, %v1111_v14  ;;  %v1276_v0 = vadd.f32 %v2669_v38, %v1110_v11  ;;  %v1623_v12 = vadd.f32 %v2716_v53, %v1449_v7  ;;  %v1448_v38 = vadd.f32 %v3493_v34, %v1274_v17 }
 0x157   : > { %v1764_v58 = vpop.f32.mrf.mxu1  ;;  %v1793_v32 = vadd.f32 %v2744_v25, %v1627_v13  ;;  %v3495_v44 = vld [vmem:[#allocation8_spill] sm:$0xff] }
 0x158   : > { %v2721_v8 = vpop.f32.mrf.mxu0  ;;  %v1451_v22 = vadd.f32 %v1424_v43, %v1277_v6  ;;  %v1450_v26 = vadd.f32 %v3492_v23, %v1276_v0  ;;  %v1789_v29 = vadd.f32 %v2740_v54, %v1623_v12  ;;  %v1787_v50 = vadd.f32 %v3495_v44, %v1621_v27 }
 0x159   : > { %v2745_v15 = vpop.f32.mrf.mxu1  ;;  %v1628_v42 = vadd.f32 %v2721_v8, %v1454_v30  ;;  %v1622_v33 = vadd.f32 %v1585_v59, %v1448_v38  ;;  %v3496_v52 = vld [vmem:[#allocation9_spill] sm:$0xff] }
 0x15a   : > { %v1625_v36 = vadd.f32 %v1598_v63, %v1451_v22  ;;  %v1601_v20 = vpop.f32.mrf.mxu0  ;;  %v1624_v21 = vadd.f32 %v2717_v51, %v1450_v26 }
 0x15b   : > { %v1767_v31 = vpop.f32.mrf.mxu1  ;;  %v1626_v54 = vadd.f32 %v1601_v20, %v1452_v39  ;;  %v1794_v14 = vadd.f32 %v2745_v15, %v1628_v42  ;;  %v3497_v19 = vld [vmem:[#allocation10_spill] sm:$0xff] }
 0x15c   : > { %v1791_v35 = vadd.f32 %v1764_v58, %v1625_v36  ;;  %v1790_v56 = vadd.f32 %v3496_v52, %v1624_v21  ;;  %v1788_v24 = vadd.f32 %v3497_v19, %v1622_v33  ;;  %v3498_v21 = vld [vmem:[#allocation3_spill] sm:$0xff] }
 0x15d   : > { %v1792_v61 = vadd.f32 %v1767_v31, %v1626_v54  ;;  %vm1985_vm2 = vcmp.eq.s32.totalorder %v3498_v21, 0 }
 0x16c   : > { %v2764_v43 = vpop.f32.mrf.mxu0 }
 0x16d   : > { %v1963_v40 = vadd.f32 %v2764_v43, %v1789_v29  ;;  %v2768_v53 = vpop.f32.mrf.mxu1 }
 0x16e   : > { %v1967_v45 = vadd.f32 %v2768_v53, %v1793_v32  ;;  %v1922_v51 = vpop.f32.mrf.mxu0 }
 0x16f   : > { %1971 = vst [vmem:[%s3434_s9 + $0x10] sm:$0xff] %v1963_v40  ;;  %v1961_v2 = vadd.f32 %v1922_v51, %v1787_v50  ;;  %v1938_v3 = vpop.f32.mrf.mxu1  ;;  %v2002_v46 = vmul.f32 %v1963_v40, %v1963_v40 }
 0x170   : > { %1975 = vst [vmem:[%s3434_s9 + $0x30] sm:$0xff] %v1967_v45  ;;  %v1965_v16 = vadd.f32 %v1938_v3, %v1791_v35  ;;  %v2765_v59 = vpop.f32.mrf.mxu0  ;;  %v2006_v9 = vmul.f32 %v1967_v45, %v1967_v45 }
 0x171   : > { %1969 = vst [vmem:[%s3434_s9] sm:$0xff] %v1961_v2  ;;  %v1964_v25 = vadd.f32 %v2765_v59, %v1790_v56  ;;  %v2769_v28 = vpop.f32.mrf.mxu1  ;;  %v2000_v1 = vmul.f32 %v1961_v2, %v1961_v2 }
 0x172   : > { %1973 = vst [vmem:[%s3434_s9 + $0x20] sm:$0xff] %v1965_v16  ;;  %v1968_v62 = vadd.f32 %v2769_v28, %v1794_v14  ;;  %v1925_v41 = vpop.f32.mrf.mxu0  ;;  %v2004_v7 = vmul.f32 %v1965_v16, %v1965_v16 }
 0x173   : > { %1972 = vst [vmem:[%s3434_s9 + $0x18] sm:$0xff] %v1964_v25  ;;  %v1962_v57 = vadd.f32 %v1925_v41, %v1788_v24  ;;  %v1941_v48 = vpop.f32.mrf.mxu1  ;;  %v2003_v6 = vmul.f32 %v1964_v25, %v1964_v25 }
 0x174   : > { %1976 = vst [vmem:[%s3434_s9 + $0x38] sm:$0xff] %v1968_v62  ;;  %v1966_v55 = vadd.f32 %v1941_v48, %v1792_v61  ;;  %v2007_v15 = vmul.f32 %v1968_v62, %v1968_v62 }
 0x175   : > { %1970 = vst [vmem:[%s3434_s9 + $0x8] sm:$0xff] %v1962_v57  ;;  %v1986_v63 = vadd.f32 %v1962_v57, %v1961_v2  ;;  %v2001_v11 = vmul.f32 %v1962_v57, %v1962_v57 }
 0x176   : > { %1974 = vst [vmem:[%s3434_s9 + $0x28] sm:$0xff] %v1966_v55  ;;  %v2005_v10 = vmul.f32 %v1966_v55, %v1966_v55 }
 0x177   : > { %v1987_v58 = vadd.f32 %v1986_v63, %v1963_v40  ;;  %v2008_v4 = vadd.f32 %v2001_v11, %v2000_v1 }
 0x179   : > { %v2009_v60 = vadd.f32 %v2008_v4, %v2002_v46  ;;  %v1988_v49 = vadd.f32 %v1987_v58, %v1964_v25 }
 0x17b   : > { %v1989_v0 = vadd.f32 %v1988_v49, %v1965_v16  ;;  %v2010_v5 = vadd.f32 %v2009_v60, %v2003_v6 }
 0x17d   : > { %v1990_v47 = vadd.f32 %v1989_v0, %v1966_v55  ;;  %v2011_v8 = vadd.f32 %v2010_v5, %v2004_v7 }
 0x17f   : > { %v1991_v17 = vadd.f32 %v1990_v47, %v1967_v45  ;;  %v2012_v12 = vadd.f32 %v2011_v8, %v2005_v10 }
 0x181   : > { %v1992_v18 = vadd.f32 %v1991_v17, %v1968_v62  ;;  %v2013_v22 = vadd.f32 %v2012_v12, %v2006_v9 }
 0x183   : > { %v1993_v13 = vrot.slane %v1992_v18, 4  ;;  %v2014_v23 = vadd.f32 %v2013_v22, %v2007_v15 }
 0x185   : > { %v1994_v26 = vadd.f32 %v1993_v13, %v1992_v18  ;;  %v2015_v27 = vrot.slane %v2014_v23, 4 }
 0x187   : > { %v1995_v30 = vrot.slane %v1994_v26, 2  ;;  %v2016_v36 = vadd.f32 %v2015_v27, %v2014_v23 }
 0x189   : > { %v1996_v20 = vadd.f32 %v1995_v30, %v1994_v26  ;;  %v2017_v34 = vrot.slane %v2016_v36, 2 }
 0x18b   : > { %v1997_v38 = vrot.slane %v1996_v20, 1  ;;  %v2018_v29 = vadd.f32 %v2017_v34, %v2016_v36 }
 0x18d   : > { %v1998_v31 = vadd.f32 %v1997_v38, %v1996_v20  ;;  %v2019_v37 = vrot.slane %v2018_v29, 1 }
 0x18f   : > { %v1999_v39 = vsel %vm1985_vm2, %v1998_v31, 0.0  ;;  %v2020_v42 = vadd.f32 %v2019_v37, %v2018_v29 }
 0x190   : > { %2022 = vst [vmem:[%s217_s12] sm:$0xff] %v1999_v39 }
 0x191   : > { %v2021_v32 = vsel %vm1985_vm2, %v2020_v42, 0.0 }
 0x192   : > { %2023 = vst [vmem:[%s221_s17] sm:$0xff] %v2021_v32 }
 0x193 PF: > { %s15_s15 = sadd.s32 1, %s2880_s15  }
 0x194   : > { %p12_p5 = scmp.ge.s32.totalorder %s15_s15, 4  }
 0x196   :  { %14 = sbr.rel (!%p12_p5) target bundleno = 1 (0x1), region = 90 }

</bundles_post_ra>
